<compile_context>
chip_gen: v7x
topology: tpu7x:2x2x1
jax: 0.10.0
libtpu: 0.0.40
codegen_flags: <defaults>
</compile_context>

<pallas_src>
import functools

import numpy as np
import jax
import jax.numpy as jnp
from jax.experimental import pallas as pl
from jax.experimental.pallas import tpu as pltpu

EPS = 1e-6          # GroupNorm eps of Normalize()
NUM_GROUPS = 4      # GroupNorm groups of Normalize()


# --------------------------------------------------------------------------
# in-kernel helpers
def _swish(x):
    return x * jax.nn.sigmoid(x)


def _group_norm(x, gmat, gamma, beta):
    # x: (R, L) with R = N*channels (sample-major rows).  gmat: (R, R)
    # per-sample block-diagonal group indicator pre-scaled by
    # 1/(channels_per_group * H * W).  Matches torch GroupNorm (biased var).
    mu = jnp.sum(jnp.dot(gmat, x, preferred_element_type=jnp.float32),
                 axis=1, keepdims=True)                       # (R,1) group means
    xc = x - mu
    var = jnp.sum(jnp.dot(gmat, xc * xc, preferred_element_type=jnp.float32),
                  axis=1, keepdims=True)                      # (R,1) group vars
    return xc * jax.lax.rsqrt(var + EPS) * gamma + beta


def _halo_masks(H, W, HW):
    # Halo masks generated in-kernel from a lane iota (no mask DMA).
    lane = jax.lax.broadcasted_iota(jnp.int32, (1, HW), 1)
    if (W & (W - 1)) == 0:
        col = lane & (W - 1)
    else:
        # TODO(synk): non-power-of-two W relies on integer mod lowering;
        # fall back to a tiny precomputed (4, HW) mask constant if needed.
        col = lane % W
    m = lambda c: jnp.where(c, 1.0, 0.0)
    return (m(col >= 1),             # dx = -1 valid (not in column 0)
            m(col <= W - 2),         # dx = +1 valid (not in column W-1)
            m(lane >= W),            # dy = -1 valid (not in row 0)
            m(lane < (H - 1) * W))   # dy = +1 valid (not in row H-1)


def _depthwise3x3(h, dw, bias, masks, W, HW):
    # Separable 3x3 depthwise conv (stride 1, zero pad 1) on a lane-dense
    # (R, H*W) slab: 2 column rolls + 2 row rolls total.
    # dw: (R, 9) tap weights, order t = (dy+1)*3 + (dx+1).  bias: (R, 1).
    m_xm, m_xp, m_ym, m_yp = masks
    # out[i] = in[i + d]  <=>  roll by (-d) mod HW (jnp.roll convention)
    c_m = m_xm * pltpu.roll(h, shift=1, axis=1)          # reads (y, x-1)
    c_p = m_xp * pltpu.roll(h, shift=HW - 1, axis=1)     # reads (y, x+1)
    rows = []
    for dyi in range(3):                                 # dy = -1, 0, +1
        t = 3 * dyi
        rows.append(dw[:, t:t + 1] * c_m
                    + dw[:, t + 1:t + 2] * h
                    + dw[:, t + 2:t + 3] * c_p)
    out = rows[1]
    out = out + m_ym * pltpu.roll(rows[0], shift=W, axis=1)       # reads row y-1
    out = out + m_yp * pltpu.roll(rows[2], shift=HW - W, axis=1)  # reads row y+1
    return out + bias


# --------------------------------------------------------------------------
# Kernel A: fused spatial/stem branch over the WHOLE batch.
#   norm1 -> fused splitconv1/splitconv2(+swish) -> dw3x3 -> pw1x1 -> norm2
#         -> swish -> dw3x3 -> pw1x1
def spatial_kernel(H, W, HW, R1, R2,
                   x_ref, mats_ref, vecs_ref, dws_ref,
                   x1_ref, hs_ref):
    masks = _halo_masks(H, W, HW)

    # packed constants (static slices of the packed slabs)
    gm1 = mats_ref[:, 0:R1]
    wsp = mats_ref[:, R1:2 * R1]
    pw1 = mats_ref[:R2, 2 * R1:2 * R1 + R2]
    gm2 = mats_ref[:R2, 2 * R1 + R2:2 * R1 + 2 * R2]
    pw2 = mats_ref[:R2, 2 * R1 + 2 * R2:2 * R1 + 3 * R2]

    g1 = vecs_ref[:, 0:1]
    bt1 = vecs_ref[:, 1:2]
    bsp = vecs_ref[:, 2:3]
    db1 = vecs_ref[:R2, 3:4]
    pb1 = vecs_ref[:R2, 4:5]
    g2 = vecs_ref[:R2, 5:6]
    bt2 = vecs_ref[:R2, 6:7]
    db2 = vecs_ref[:R2, 7:8]
    pb2 = vecs_ref[:R2, 8:9]
    dws = dws_ref[...]

    x = x_ref[...]
    hn = _group_norm(x, gm1, g1, bt1)

    # fused splitconv1 / splitconv2 (one K=R1 matmul, rows pre-ordered so the
    # first R2 rows are splitconv1 and the last R2 rows are splitconv2)
    s = jnp.dot(wsp, hn, preferred_element_type=jnp.float32) + bsp
    x1_ref[...] = s[:R2]                # splitconv1 -> frequency branch

    h = _swish(s[R2:])                  # splitconv2 + swish
    # conv1 = depthwise 3x3 + pointwise 1x1, then norm2 + swish
    h = _depthwise3x3(h, dws[:, 0:9], db1, masks, W, HW)
    h = jnp.dot(pw1, h, preferred_element_type=jnp.float32) + pb1
    h = _group_norm(h, gm2, g2, bt2)
    h = _swish(h)
    # TODO(synk): nn.Dropout runs in eval mode here (identity).
    # conv2 = depthwise 3x3 + pointwise 1x1 (no activation)
    h = _depthwise3x3(h, dws[:, 9:18], db2, masks, W, HW)
    hs_ref[...] = jnp.dot(pw2, h, preferred_element_type=jnp.float32) + pb2


# --------------------------------------------------------------------------
# Kernel B: ampconv / phaconv fused as block-diagonal 1x1 convs on a
# sublane-stacked [amp ; pha] slab, plus recombination into [re ; im].
def freq_kernel(R2, ap_ref, w_ref, b_ref, o_ref):
    R = 2 * R2
    w1 = w_ref[:, 0:R]
    w2 = w_ref[:, R:2 * R]
    b1 = b_ref[:, 0:1]
    b2 = b_ref[:, 1:2]
    h = jnp.dot(w1, ap_ref[...], preferred_element_type=jnp.float32) + b1
    h = jnp.where(h >= 0, h, 0.1 * h)            # LeakyReLU(0.1)
    h = jnp.dot(w2, h, preferred_element_type=jnp.float32) + b2
    a = h[:R2]
    p = h[R2:]
    o_ref[:R2, :] = a * jnp.cos(p)
    o_ref[R2:, :] = a * jnp.sin(p)


# --------------------------------------------------------------------------
# Kernel C: mergeconv on [x1 ; h_spatial] (weight pre-split / block-diag in
# the wrapper) + residual add.
def merge_kernel(R2, x1_ref, hs_ref, x_ref, w_ref, o_ref):
    wm1 = w_ref[:, 0:R2]
    wm2 = w_ref[:, R2:2 * R2]
    bm = w_ref[:, 2 * R2:2 * R2 + 1]
    o_ref[...] = (x_ref[...]
                  + jnp.dot(wm1, x1_ref[...], preferred_element_type=jnp.float32)
                  + jnp.dot(wm2, hs_ref[...], preferred_element_type=jnp.float32)
                  + bm)


# --------------------------------------------------------------------------
# wrapper-side layout plumbing
def _group_indicator(C, num_groups, HW, N):
    # per-sample block-diagonal (N*C, N*C) indicator scaled by 1/(cpg*HW)
    cpg = C // num_groups
    g = np.arange(C) // cpg
    m = (g[:, None] == g[None, :]).astype(np.float32) / float(cpg * HW)
    return jnp.asarray(np.kron(np.eye(N, dtype=np.float32), m))


def _bd(m, n):
    # kron(I_n, m): per-sample block-diagonal weight
    return jnp.kron(jnp.eye(n, dtype=m.dtype), m)


def _bd2(a, b):
    za = jnp.zeros((a.shape[0], b.shape[1]), a.dtype)
    zb = jnp.zeros((b.shape[0], a.shape[1]), a.dtype)
    return jnp.concatenate(
        [jnp.concatenate([a, za], axis=1), jnp.concatenate([zb, b], axis=1)], axis=0)


def _pad_rows(m, rows):
    return jnp.concatenate(
        [m, jnp.zeros((rows - m.shape[0], m.shape[1]), m.dtype)], axis=0)


def res_four_forward(x, p):
    N, C, H, W = x.shape
    C2 = C // 2
    HW = H * W
    Wr = W // 2 + 1
    HWr = H * Wr
    R1, R2 = N * C, N * C2
    Lp = ((HWr + 127) // 128) * 128        # lane-padded freq width (mult. of 128)

    xs = x.reshape(R1, HW)                 # batch folded onto sublanes

    tN = lambda v: jnp.tile(v, (N, 1))

    # packed constant slabs for the spatial kernel
    gm1 = _group_indicator(C, NUM_GROUPS, HW, N)            # (R1,R1)
    gm2 = _group_indicator(C2, NUM_GROUPS, HW, N)           # (R2,R2)
    wsplit = jnp.concatenate([_bd(p['w_s1'], N), _bd(p['w_s2'], N)], axis=0)
    mats = jnp.concatenate(
        [gm1, wsplit,
         _pad_rows(_bd(p['pw1'], N), R1),
         _pad_rows(gm2, R1),
         _pad_rows(_bd(p['pw2'], N), R1)], axis=1)           # (R1, 2*R1 + 3*R2)

    bsplit = jnp.concatenate([tN(p['b_s1']), tN(p['b_s2'])], axis=0)
    vecs = jnp.concatenate(
        [tN(p['g1']), tN(p['bt1']), bsplit,
         _pad_rows(tN(p['db1']), R1), _pad_rows(tN(p['pb1']), R1),
         _pad_rows(tN(p['g2']), R1), _pad_rows(tN(p['bt2']), R1),
         _pad_rows(tN(p['db2']), R1), _pad_rows(tN(p['pb2']), R1)], axis=1)  # (R1,9)

    dws = jnp.concatenate([tN(p['dw1'].reshape(C2, 9)),
                           tN(p['dw2'].reshape(C2, 9))], axis=1)             # (R2,18)

    # --- Kernel A: fused spatial branch, single invocation over the whole batch
    x1_pre, h_sp = pl.pallas_call(
        functools.partial(spatial_kernel, H, W, HW, R1, R2),
        out_shape=(jax.ShapeDtypeStruct((R2, HW), jnp.float32),
                   jax.ShapeDtypeStruct((R2, HW), jnp.float32)),
    )(xs, mats, vecs, dws)

    # --- frequency branch ---
    # TODO(synk): rfft2/irfft2 and abs/angle (atan2) of the complex spectrum
    # have no Pallas TPU lowering; they stay in plain JAX.
    Xc = jnp.fft.rfft2(x1_pre.reshape(N, C2, H, W), norm='backward')
    amp = jnp.abs(Xc).astype(jnp.float32).reshape(R2, HWr)
    pha = jnp.angle(Xc).astype(jnp.float32).reshape(R2, HWr)
    ap = jnp.pad(jnp.concatenate([amp, pha], axis=0), ((0, 0), (0, Lp - HWr)))

    wf1 = _bd2(_bd(p['wa1'], N), _bd(p['wp1'], N))           # (2*R2, 2*R2)
    wf2 = _bd2(_bd(p['wa2'], N), _bd(p['wp2'], N))
    wfreq = jnp.concatenate([wf1, wf2], axis=1)              # (2*R2, 4*R2)
    bfreq = jnp.concatenate(
        [jnp.concatenate([tN(p['ba1']), tN(p['bp1'])], axis=0),
         jnp.concatenate([tN(p['ba2']), tN(p['bp2'])], axis=0)], axis=1)     # (2*R2,2)

    reim = pl.pallas_call(
        functools.partial(freq_kernel, R2),
        out_shape=jax.ShapeDtypeStruct((2 * R2, Lp), jnp.float32),
    )(ap, wfreq, bfreq)

    re = reim[:R2, :HWr].reshape(N, C2, H, Wr)
    im = reim[R2:, :HWr].reshape(N, C2, H, Wr)
    x1 = jnp.fft.irfft2(jax.lax.complex(re, im), s=(H, W), norm='backward')
    x1 = x1.astype(jnp.float32).reshape(R2, HW)

    # --- mergeconv (pre-split, block-diagonal) + residual ---
    wmerge = jnp.concatenate([_bd(p['wm'][:, :C2], N),
                              _bd(p['wm'][:, C2:], N),
                              tN(p['bm'])], axis=1)          # (R1, 2*R2 + 1)
    out = pl.pallas_call(
        functools.partial(merge_kernel, R2),
        out_shape=jax.ShapeDtypeStruct((R1, HW), jnp.float32),
    )(x1, h_sp, xs, wmerge)

    return out.reshape(N, C, H, W)
    # (in_channels == out_channels, so no shortcut conv branch)


# --------------------------------------------------------------------------
# pure-JAX reference (for correctness verification)
def res_four_reference(x, p):
    N, C, H, W = x.shape
    C2 = C // 2

    def gn(h, gamma, beta, groups=NUM_GROUPS):
        n, c, hh, ww = h.shape
        hg = h.reshape(n, groups, c // groups, hh, ww)
        mu = hg.mean(axis=(2, 3, 4), keepdims=True)
        var = hg.var(axis=(2, 3, 4), keepdims=True)
        hg = (hg - mu) / jnp.sqrt(var + EPS)
        h = hg.reshape(n, c, hh, ww)
        return h * gamma.reshape(1, c, 1, 1) + beta.reshape(1, c, 1, 1)

    def conv1x1(h, w, b):
        return jnp.einsum('nchw,oc->nohw', h, w) + b.reshape(1, -1, 1, 1)

    def dwconv3(h, w, b):
        out = jax.lax.conv_general_dilated(
            h, w.reshape(-1, 1, 3, 3), (1, 1), 'SAME',
            dimension_numbers=('NCHW', 'OIHW', 'NCHW'),
            feature_group_count=h.shape[1])
        return out + b.reshape(1, -1, 1, 1)

    def swish(v):
        return v * jax.nn.sigmoid(v)

    h = gn(x, p['g1'], p['bt1'])
    x1 = conv1x1(h, p['w_s1'], p['b_s1'])
    X = jnp.fft.rfft2(x1, norm='backward')
    amp, pha = jnp.abs(X), jnp.angle(X)

    def seq(v, w1, b1, w2, b2):
        v = conv1x1(v, w1, b1)
        v = jnp.where(v >= 0, v, 0.1 * v)
        return conv1x1(v, w2, b2)

    amp = seq(amp, p['wa1'], p['ba1'], p['wa2'], p['ba2'])
    pha = seq(pha, p['wp1'], p['bp1'], p['wp2'], p['bp2'])
    Xc = jax.lax.complex(amp * jnp.cos(pha), amp * jnp.sin(pha))
    x1 = jnp.fft.irfft2(Xc, s=(H, W), norm='backward')

    h2 = swish(conv1x1(h, p['w_s2'], p['b_s2']))
    h2 = dwconv3(h2, p['dw1'], p['db1'])
    h2 = conv1x1(h2, p['pw1'], p['pb1'])
    h2 = swish(gn(h2, p['g2'], p['bt2']))
    h2 = dwconv3(h2, p['dw2'], p['db2'])
    h2 = conv1x1(h2, p['pw2'], p['pb2'])

    hcat = jnp.concatenate([x1, h2], axis=1)
    return x + conv1x1(hcat, p['wm'], p['bm'])


# --------------------------------------------------------------------------
# Deterministic synthetic parameter init (shapes from Res_four.__init__,
# in_channels == out_channels so no shortcut conv).
def init_params(key, C):
    C2 = C // 2
    keys = jax.random.split(key, 32)
    it = iter(keys)

    def nrm(shape, scale=0.2):
        return (scale * jax.random.normal(next(it), shape)).astype(jnp.float32)

    return dict(
        g1=(1.0 + 0.1 * jax.random.normal(next(it), (C, 1))).astype(jnp.float32),
        bt1=nrm((C, 1), 0.1),
        w_s1=nrm((C2, C)), b_s1=nrm((C2, 1), 0.1),        # splitconv1 (1x1)
        w_s2=nrm((C2, C)), b_s2=nrm((C2, 1), 0.1),        # splitconv2 (1x1)
        dw1=nrm((C2, 3, 3)), db1=nrm((C2, 1), 0.1),       # conv1.depthwise (3x3)
        pw1=nrm((C2, C2)), pb1=nrm((C2, 1), 0.1),         # conv1.pointwise (1x1)
        g2=(1.0 + 0.1 * jax.random.normal(next(it), (C2, 1))).astype(jnp.float32),
        bt2=nrm((C2, 1), 0.1),
        dw2=nrm((C2, 3, 3)), db2=nrm((C2, 1), 0.1),       # conv2.depthwise
        pw2=nrm((C2, C2)), pb2=nrm((C2, 1), 0.1),         # conv2.pointwise
        wm=nrm((C, C)), bm=nrm((C, 1), 0.1),              # mergeconv (1x1)
        wa1=nrm((C2, C2)), ba1=nrm((C2, 1), 0.1),         # ampconv[0]
        wa2=nrm((C2, C2)), ba2=nrm((C2, 1), 0.1),         # ampconv[2]
        wp1=nrm((C2, C2)), bp1=nrm((C2, 1), 0.1),         # phaconv[0]
        wp2=nrm((C2, C2)), bp2=nrm((C2, 1), 0.1),         # phaconv[2]
    )


if __name__ == "__main__":
    key = jax.random.PRNGKey(0)
    kx, kp = jax.random.split(key)
    N, C, H, W = 2, 8, 16, 16          # in_channels = out_channels = 8
    x = jax.random.normal(kx, (N, C, H, W), dtype=jnp.float32)
    params = init_params(kp, C)

    fwd = jax.jit(res_four_forward)
    out = jax.block_until_ready(fwd(x, params))
    assert out.shape == (N, C, H, W) and out.dtype == jnp.float32
    assert bool(jnp.all(jnp.isfinite(out)))

    # correctness check against a pure-JAX reference of the PyTorch module
    ref = jax.block_until_ready(jax.jit(res_four_reference)(x, params))
    np.testing.assert_allclose(np.asarray(out), np.asarray(ref),
                               rtol=2e-3, atol=2e-3)
    print("KERNEL_OK")
</pallas_src>

<mosaic_0001>
module attributes {stable_mosaic.version = 11 : i64} {
  func.func @spatial_kernel(%arg0: memref<16x256xf32, #tpu.memory_space<vmem>>, %arg1: memref<16x56xf32, #tpu.memory_space<vmem>>, %arg2: memref<16x9xf32, #tpu.memory_space<vmem>>, %arg3: memref<8x18xf32, #tpu.memory_space<vmem>>, %arg4: memref<8x256xf32, #tpu.memory_space<vmem>>, %arg5: memref<8x256xf32, #tpu.memory_space<vmem>>) attributes {dimension_semantics = [], scalar_prefetch = 0 : i64, scratch_operands = 0 : i64, tpu.core_type = #tpu.core_type<tc>} {
    %0 = tpu.iota {dimensions = array<i32: 1>} : vector<1x256xi32>
    %c15_i32 = arith.constant 15 : i32
    %1 = vector.broadcast %c15_i32 : i32 to vector<1x256xi32>
    %2 = arith.andi %0, %1 : vector<1x256xi32>
    %c1_i32 = arith.constant 1 : i32
    %3 = vector.broadcast %c1_i32 : i32 to vector<1x256xi32>
    %4 = arith.cmpi sge, %2, %3 : vector<1x256xi32>
    %cst = arith.constant 1.000000e+00 : f32
    %cst_0 = arith.constant 0.000000e+00 : f32
    %5 = vector.broadcast %cst : f32 to vector<1x256xf32>
    %6 = vector.broadcast %cst_0 : f32 to vector<1x256xf32>
    %7 = arith.select %4, %5, %6 : vector<1x256xi1>, vector<1x256xf32>
    %c14_i32 = arith.constant 14 : i32
    %8 = vector.broadcast %c14_i32 : i32 to vector<1x256xi32>
    %9 = arith.cmpi sle, %2, %8 : vector<1x256xi32>
    %cst_1 = arith.constant 1.000000e+00 : f32
    %cst_2 = arith.constant 0.000000e+00 : f32
    %10 = vector.broadcast %cst_1 : f32 to vector<1x256xf32>
    %11 = vector.broadcast %cst_2 : f32 to vector<1x256xf32>
    %12 = arith.select %9, %10, %11 : vector<1x256xi1>, vector<1x256xf32>
    %c16_i32 = arith.constant 16 : i32
    %13 = vector.broadcast %c16_i32 : i32 to vector<1x256xi32>
    %14 = arith.cmpi sge, %0, %13 : vector<1x256xi32>
    %cst_3 = arith.constant 1.000000e+00 : f32
    %cst_4 = arith.constant 0.000000e+00 : f32
    %15 = vector.broadcast %cst_3 : f32 to vector<1x256xf32>
    %16 = vector.broadcast %cst_4 : f32 to vector<1x256xf32>
    %17 = arith.select %14, %15, %16 : vector<1x256xi1>, vector<1x256xf32>
    %c240_i32 = arith.constant 240 : i32
    %18 = vector.broadcast %c240_i32 : i32 to vector<1x256xi32>
    %19 = arith.cmpi slt, %0, %18 : vector<1x256xi32>
    %cst_5 = arith.constant 1.000000e+00 : f32
    %cst_6 = arith.constant 0.000000e+00 : f32
    %20 = vector.broadcast %cst_5 : f32 to vector<1x256xf32>
    %21 = vector.broadcast %cst_6 : f32 to vector<1x256xf32>
    %22 = arith.select %19, %20, %21 : vector<1x256xi1>, vector<1x256xf32>
    %c0 = arith.constant 0 : index
    %c0_7 = arith.constant 0 : index
    %23 = vector.load %arg1[%c0, %c0_7] : memref<16x56xf32, #tpu.memory_space<vmem>>, vector<16x16xf32>
    %c0_8 = arith.constant 0 : index
    %c16 = arith.constant 16 : index
    %24 = vector.load %arg1[%c0_8, %c16] : memref<16x56xf32, #tpu.memory_space<vmem>>, vector<16x16xf32>
    %c0_9 = arith.constant 0 : index
    %c32 = arith.constant 32 : index
    %25 = vector.load %arg1[%c0_9, %c32] : memref<16x56xf32, #tpu.memory_space<vmem>>, vector<8x8xf32>
    %c0_10 = arith.constant 0 : index
    %c40 = arith.constant 40 : index
    %26 = vector.load %arg1[%c0_10, %c40] : memref<16x56xf32, #tpu.memory_space<vmem>>, vector<8x8xf32>
    %c0_11 = arith.constant 0 : index
    %c48 = arith.constant 48 : index
    %27 = vector.load %arg1[%c0_11, %c48] : memref<16x56xf32, #tpu.memory_space<vmem>>, vector<8x8xf32>
    %c0_12 = arith.constant 0 : index
    %c0_13 = arith.constant 0 : index
    %28 = vector.load %arg2[%c0_12, %c0_13] : memref<16x9xf32, #tpu.memory_space<vmem>>, vector<16x1xf32>
    %c0_14 = arith.constant 0 : index
    %c1 = arith.constant 1 : index
    %29 = vector.load %arg2[%c0_14, %c1] : memref<16x9xf32, #tpu.memory_space<vmem>>, vector<16x1xf32>
    %c0_15 = arith.constant 0 : index
    %c2 = arith.constant 2 : index
    %30 = vector.load %arg2[%c0_15, %c2] : memref<16x9xf32, #tpu.memory_space<vmem>>, vector<16x1xf32>
    %c0_16 = arith.constant 0 : index
    %c3 = arith.constant 3 : index
    %31 = vector.load %arg2[%c0_16, %c3] : memref<16x9xf32, #tpu.memory_space<vmem>>, vector<8x1xf32>
    %c0_17 = arith.constant 0 : index
    %c4 = arith.constant 4 : index
    %32 = vector.load %arg2[%c0_17, %c4] : memref<16x9xf32, #tpu.memory_space<vmem>>, vector<8x1xf32>
    %c0_18 = arith.constant 0 : index
    %c5 = arith.constant 5 : index
    %33 = vector.load %arg2[%c0_18, %c5] : memref<16x9xf32, #tpu.memory_space<vmem>>, vector<8x1xf32>
    %c0_19 = arith.constant 0 : index
    %c6 = arith.constant 6 : index
    %34 = vector.load %arg2[%c0_19, %c6] : memref<16x9xf32, #tpu.memory_space<vmem>>, vector<8x1xf32>
    %c0_20 = arith.constant 0 : index
    %c7 = arith.constant 7 : index
    %35 = vector.load %arg2[%c0_20, %c7] : memref<16x9xf32, #tpu.memory_space<vmem>>, vector<8x1xf32>
    %c0_21 = arith.constant 0 : index
    %c8 = arith.constant 8 : index
    %36 = vector.load %arg2[%c0_21, %c8] : memref<16x9xf32, #tpu.memory_space<vmem>>, vector<8x1xf32>
    %c0_22 = arith.constant 0 : index
    %c0_23 = arith.constant 0 : index
    %37 = vector.load %arg3[%c0_22, %c0_23] : memref<8x18xf32, #tpu.memory_space<vmem>>, vector<8x18xf32>
    %c0_24 = arith.constant 0 : index
    %c0_25 = arith.constant 0 : index
    %38 = vector.load %arg0[%c0_24, %c0_25] : memref<16x256xf32, #tpu.memory_space<vmem>>, vector<16x256xf32>
    %cst_26 = arith.constant dense<0.000000e+00> : vector<16x256xf32>
    %39 = tpu.matmul %23, %38, %cst_26 {dimension_numbers = #tpu.dot_dimension_numbers<[1], [0], [0], [1], [0, 0, 1, 1], [], []>} : vector<16x16xf32>, vector<16x256xf32>, vector<16x256xf32> -> vector<16x256xf32>
    %cst_27 = arith.constant dense<0.000000e+00> : vector<16xf32>
    %40 = vector.multi_reduction <add>, %39, %cst_27 [1] : vector<16x256xf32> to vector<16xf32>
    %41 = vector.shape_cast %40 : vector<16xf32> to vector<16x1xf32>
    %42 = vector.broadcast %41 : vector<16x1xf32> to vector<16x256xf32>
    %43 = arith.subf %38, %42 : vector<16x256xf32>
    %44 = arith.mulf %43, %43 : vector<16x256xf32>
    %cst_28 = arith.constant dense<0.000000e+00> : vector<16x256xf32>
    %45 = tpu.matmul %23, %44, %cst_28 {dimension_numbers = #tpu.dot_dimension_numbers<[1], [0], [0], [1], [0, 0, 1, 1], [], []>} : vector<16x16xf32>, vector<16x256xf32>, vector<16x256xf32> -> vector<16x256xf32>
    %cst_29 = arith.constant dense<0.000000e+00> : vector<16xf32>
    %46 = vector.multi_reduction <add>, %45, %cst_29 [1] : vector<16x256xf32> to vector<16xf32>
    %47 = vector.shape_cast %46 : vector<16xf32> to vector<16x1xf32>
    %cst_30 = arith.constant 9.99999997E-7 : f32
    %48 = vector.broadcast %cst_30 : f32 to vector<16x1xf32>
    %49 = arith.addf %47, %48 : vector<16x1xf32>
    %50 = math.rsqrt %49 : vector<16x1xf32>
    %51 = vector.broadcast %50 : vector<16x1xf32> to vector<16x256xf32>
    %52 = arith.mulf %43, %51 : vector<16x256xf32>
    %53 = vector.broadcast %28 : vector<16x1xf32> to vector<16x256xf32>
    %54 = arith.mulf %52, %53 : vector<16x256xf32>
    %55 = vector.broadcast %29 : vector<16x1xf32> to vector<16x256xf32>
    %56 = arith.addf %54, %55 : vector<16x256xf32>
    %cst_31 = arith.constant dense<0.000000e+00> : vector<16x256xf32>
    %57 = tpu.matmul %24, %56, %cst_31 {dimension_numbers = #tpu.dot_dimension_numbers<[1], [0], [0], [1], [0, 0, 1, 1], [], []>} : vector<16x16xf32>, vector<16x256xf32>, vector<16x256xf32> -> vector<16x256xf32>
    %58 = vector.broadcast %30 : vector<16x1xf32> to vector<16x256xf32>
    %59 = arith.addf %57, %58 : vector<16x256xf32>
    %60 = vector.extract_strided_slice %59 {offsets = [0, 0], sizes = [8, 256], strides = [1, 1]} : vector<16x256xf32> to vector<8x256xf32>
    %c0_32 = arith.constant 0 : index
    %c0_33 = arith.constant 0 : index
    %61 = vector.load %arg4[%c0_32, %c0_33] : memref<8x256xf32, #tpu.memory_space<vmem>>, vector<8x256xf32>
    tpu.vector_store %arg4[%c0_32, %c0_33], %60 {strides = array<i32>} : memref<8x256xf32, #tpu.memory_space<vmem>>, vector<8x256xf32>,
    %62 = vector.extract_strided_slice %59 {offsets = [8, 0], sizes = [8, 256], strides = [1, 1]} : vector<16x256xf32> to vector<8x256xf32>
    %63 = arith.negf %62 : vector<8x256xf32>
    %64 = math.exp %63 : vector<8x256xf32>
    %cst_34 = arith.constant 1.000000e+00 : f32
    %65 = vector.broadcast %cst_34 : f32 to vector<8x256xf32>
    %66 = arith.addf %65, %64 : vector<8x256xf32>
    %67 = arith.divf %65, %66 : vector<8x256xf32>
    %68 = arith.mulf %62, %67 : vector<8x256xf32>
    %69 = vector.extract_strided_slice %37 {offsets = [0, 0], sizes = [8, 9], strides = [1, 1]} : vector<8x18xf32> to vector<8x9xf32>
    %c1_i32_35 = arith.constant 1 : i32
    %70 = tpu.dynamic_rotate %68 by %c1_i32_35 dim 1 : vector<8x256xf32>, i32 -> vector<8x256xf32>
    %71 = vector.broadcast %7 : vector<1x256xf32> to vector<8x256xf32>
    %72 = arith.mulf %71, %70 : vector<8x256xf32>
    %c255_i32 = arith.constant 255 : i32
    %73 = tpu.dynamic_rotate %68 by %c255_i32 dim 1 : vector<8x256xf32>, i32 -> vector<8x256xf32>
    %74 = vector.broadcast %12 : vector<1x256xf32> to vector<8x256xf32>
    %75 = arith.mulf %74, %73 : vector<8x256xf32>
    %76 = vector.extract_strided_slice %69 {offsets = [0, 0], sizes = [8, 1], strides = [1, 1]} : vector<8x9xf32> to vector<8x1xf32>
    %77 = vector.broadcast %76 : vector<8x1xf32> to vector<8x256xf32>
    %78 = arith.mulf %77, %72 : vector<8x256xf32>
    %79 = vector.extract_strided_slice %69 {offsets = [0, 1], sizes = [8, 1], strides = [1, 1]} : vector<8x9xf32> to vector<8x1xf32>
    %80 = vector.broadcast %79 : vector<8x1xf32> to vector<8x256xf32>
    %81 = arith.mulf %80, %68 : vector<8x256xf32>
    %82 = arith.addf %78, %81 : vector<8x256xf32>
    %83 = vector.extract_strided_slice %69 {offsets = [0, 2], sizes = [8, 1], strides = [1, 1]} : vector<8x9xf32> to vector<8x1xf32>
    %84 = vector.broadcast %83 : vector<8x1xf32> to vector<8x256xf32>
    %85 = arith.mulf %84, %75 : vector<8x256xf32>
    %86 = arith.addf %82, %85 : vector<8x256xf32>
    %87 = vector.extract_strided_slice %69 {offsets = [0, 3], sizes = [8, 1], strides = [1, 1]} : vector<8x9xf32> to vector<8x1xf32>
    %88 = vector.broadcast %87 : vector<8x1xf32> to vector<8x256xf32>
    %89 = arith.mulf %88, %72 : vector<8x256xf32>
    %90 = vector.extract_strided_slice %69 {offsets = [0, 4], sizes = [8, 1], strides = [1, 1]} : vector<8x9xf32> to vector<8x1xf32>
    %91 = vector.broadcast %90 : vector<8x1xf32> to vector<8x256xf32>
    %92 = arith.mulf %91, %68 : vector<8x256xf32>
    %93 = arith.addf %89, %92 : vector<8x256xf32>
    %94 = vector.extract_strided_slice %69 {offsets = [0, 5], sizes = [8, 1], strides = [1, 1]} : vector<8x9xf32> to vector<8x1xf32>
    %95 = vector.broadcast %94 : vector<8x1xf32> to vector<8x256xf32>
    %96 = arith.mulf %95, %75 : vector<8x256xf32>
    %97 = arith.addf %93, %96 : vector<8x256xf32>
    %98 = vector.extract_strided_slice %69 {offsets = [0, 6], sizes = [8, 1], strides = [1, 1]} : vector<8x9xf32> to vector<8x1xf32>
    %99 = vector.broadcast %98 : vector<8x1xf32> to vector<8x256xf32>
    %100 = arith.mulf %99, %72 : vector<8x256xf32>
    %101 = vector.extract_strided_slice %69 {offsets = [0, 7], sizes = [8, 1], strides = [1, 1]} : vector<8x9xf32> to vector<8x1xf32>
    %102 = vector.broadcast %101 : vector<8x1xf32> to vector<8x256xf32>
    %103 = arith.mulf %102, %68 : vector<8x256xf32>
    %104 = arith.addf %100, %103 : vector<8x256xf32>
    %105 = vector.extract_strided_slice %69 {offsets = [0, 8], sizes = [8, 1], strides = [1, 1]} : vector<8x9xf32> to vector<8x1xf32>
    %106 = vector.broadcast %105 : vector<8x1xf32> to vector<8x256xf32>
    %107 = arith.mulf %106, %75 : vector<8x256xf32>
    %108 = arith.addf %104, %107 : vector<8x256xf32>
    %c16_i32_36 = arith.constant 16 : i32
    %109 = tpu.dynamic_rotate %86 by %c16_i32_36 dim 1 : vector<8x256xf32>, i32 -> vector<8x256xf32>
    %110 = vector.broadcast %17 : vector<1x256xf32> to vector<8x256xf32>
    %111 = arith.mulf %110, %109 : vector<8x256xf32>
    %112 = arith.addf %97, %111 : vector<8x256xf32>
    %c240_i32_37 = arith.constant 240 : i32
    %113 = tpu.dynamic_rotate %108 by %c240_i32_37 dim 1 : vector<8x256xf32>, i32 -> vector<8x256xf32>
    %114 = vector.broadcast %22 : vector<1x256xf32> to vector<8x256xf32>
    %115 = arith.mulf %114, %113 : vector<8x256xf32>
    %116 = arith.addf %112, %115 : vector<8x256xf32>
    %117 = vector.broadcast %31 : vector<8x1xf32> to vector<8x256xf32>
    %118 = arith.addf %116, %117 : vector<8x256xf32>
    %cst_38 = arith.constant dense<0.000000e+00> : vector<8x256xf32>
    %119 = tpu.matmul %25, %118, %cst_38 {dimension_numbers = #tpu.dot_dimension_numbers<[1], [0], [0], [1], [0, 0, 1, 1], [], []>} : vector<8x8xf32>, vector<8x256xf32>, vector<8x256xf32> -> vector<8x256xf32>
    %120 = vector.broadcast %32 : vector<8x1xf32> to vector<8x256xf32>
    %121 = arith.addf %119, %120 : vector<8x256xf32>
    %cst_39 = arith.constant dense<0.000000e+00> : vector<8x256xf32>
    %122 = tpu.matmul %26, %121, %cst_39 {dimension_numbers = #tpu.dot_dimension_numbers<[1], [0], [0], [1], [0, 0, 1, 1], [], []>} : vector<8x8xf32>, vector<8x256xf32>, vector<8x256xf32> -> vector<8x256xf32>
    %cst_40 = arith.constant dense<0.000000e+00> : vector<8xf32>
    %123 = vector.multi_reduction <add>, %122, %cst_40 [1] : vector<8x256xf32> to vector<8xf32>
    %124 = vector.shape_cast %123 : vector<8xf32> to vector<8x1xf32>
    %125 = vector.broadcast %124 : vector<8x1xf32> to vector<8x256xf32>
    %126 = arith.subf %121, %125 : vector<8x256xf32>
    %127 = arith.mulf %126, %126 : vector<8x256xf32>
    %cst_41 = arith.constant dense<0.000000e+00> : vector<8x256xf32>
    %128 = tpu.matmul %26, %127, %cst_41 {dimension_numbers = #tpu.dot_dimension_numbers<[1], [0], [0], [1], [0, 0, 1, 1], [], []>} : vector<8x8xf32>, vector<8x256xf32>, vector<8x256xf32> -> vector<8x256xf32>
    %cst_42 = arith.constant dense<0.000000e+00> : vector<8xf32>
    %129 = vector.multi_reduction <add>, %128, %cst_42 [1] : vector<8x256xf32> to vector<8xf32>
    %130 = vector.shape_cast %129 : vector<8xf32> to vector<8x1xf32>
    %cst_43 = arith.constant 9.99999997E-7 : f32
    %131 = vector.broadcast %cst_43 : f32 to vector<8x1xf32>
    %132 = arith.addf %130, %131 : vector<8x1xf32>
    %133 = math.rsqrt %132 : vector<8x1xf32>
    %134 = vector.broadcast %133 : vector<8x1xf32> to vector<8x256xf32>
    %135 = arith.mulf %126, %134 : vector<8x256xf32>
    %136 = vector.broadcast %33 : vector<8x1xf32> to vector<8x256xf32>
    %137 = arith.mulf %135, %136 : vector<8x256xf32>
    %138 = vector.broadcast %34 : vector<8x1xf32> to vector<8x256xf32>
    %139 = arith.addf %137, %138 : vector<8x256xf32>
    %140 = arith.negf %139 : vector<8x256xf32>
    %141 = math.exp %140 : vector<8x256xf32>
    %cst_44 = arith.constant 1.000000e+00 : f32
    %142 = vector.broadcast %cst_44 : f32 to vector<8x256xf32>
    %143 = arith.addf %142, %141 : vector<8x256xf32>
    %144 = arith.divf %142, %143 : vector<8x256xf32>
    %145 = arith.mulf %139, %144 : vector<8x256xf32>
    %146 = vector.extract_strided_slice %37 {offsets = [0, 9], sizes = [8, 9], strides = [1, 1]} : vector<8x18xf32> to vector<8x9xf32>
    %c1_i32_45 = arith.constant 1 : i32
    %147 = tpu.dynamic_rotate %145 by %c1_i32_45 dim 1 : vector<8x256xf32>, i32 -> vector<8x256xf32>
    %148 = vector.broadcast %7 : vector<1x256xf32> to vector<8x256xf32>
    %149 = arith.mulf %148, %147 : vector<8x256xf32>
    %c255_i32_46 = arith.constant 255 : i32
    %150 = tpu.dynamic_rotate %145 by %c255_i32_46 dim 1 : vector<8x256xf32>, i32 -> vector<8x256xf32>
    %151 = vector.broadcast %12 : vector<1x256xf32> to vector<8x256xf32>
    %152 = arith.mulf %151, %150 : vector<8x256xf32>
    %153 = vector.extract_strided_slice %146 {offsets = [0, 0], sizes = [8, 1], strides = [1, 1]} : vector<8x9xf32> to vector<8x1xf32>
    %154 = vector.broadcast %153 : vector<8x1xf32> to vector<8x256xf32>
    %155 = arith.mulf %154, %149 : vector<8x256xf32>
    %156 = vector.extract_strided_slice %146 {offsets = [0, 1], sizes = [8, 1], strides = [1, 1]} : vector<8x9xf32> to vector<8x1xf32>
    %157 = vector.broadcast %156 : vector<8x1xf32> to vector<8x256xf32>
    %158 = arith.mulf %157, %145 : vector<8x256xf32>
    %159 = arith.addf %155, %158 : vector<8x256xf32>
    %160 = vector.extract_strided_slice %146 {offsets = [0, 2], sizes = [8, 1], strides = [1, 1]} : vector<8x9xf32> to vector<8x1xf32>
    %161 = vector.broadcast %160 : vector<8x1xf32> to vector<8x256xf32>
    %162 = arith.mulf %161, %152 : vector<8x256xf32>
    %163 = arith.addf %159, %162 : vector<8x256xf32>
    %164 = vector.extract_strided_slice %146 {offsets = [0, 3], sizes = [8, 1], strides = [1, 1]} : vector<8x9xf32> to vector<8x1xf32>
    %165 = vector.broadcast %164 : vector<8x1xf32> to vector<8x256xf32>
    %166 = arith.mulf %165, %149 : vector<8x256xf32>
    %167 = vector.extract_strided_slice %146 {offsets = [0, 4], sizes = [8, 1], strides = [1, 1]} : vector<8x9xf32> to vector<8x1xf32>
    %168 = vector.broadcast %167 : vector<8x1xf32> to vector<8x256xf32>
    %169 = arith.mulf %168, %145 : vector<8x256xf32>
    %170 = arith.addf %166, %169 : vector<8x256xf32>
    %171 = vector.extract_strided_slice %146 {offsets = [0, 5], sizes = [8, 1], strides = [1, 1]} : vector<8x9xf32> to vector<8x1xf32>
    %172 = vector.broadcast %171 : vector<8x1xf32> to vector<8x256xf32>
    %173 = arith.mulf %172, %152 : vector<8x256xf32>
    %174 = arith.addf %170, %173 : vector<8x256xf32>
    %175 = vector.extract_strided_slice %146 {offsets = [0, 6], sizes = [8, 1], strides = [1, 1]} : vector<8x9xf32> to vector<8x1xf32>
    %176 = vector.broadcast %175 : vector<8x1xf32> to vector<8x256xf32>
    %177 = arith.mulf %176, %149 : vector<8x256xf32>
    %178 = vector.extract_strided_slice %146 {offsets = [0, 7], sizes = [8, 1], strides = [1, 1]} : vector<8x9xf32> to vector<8x1xf32>
    %179 = vector.broadcast %178 : vector<8x1xf32> to vector<8x256xf32>
    %180 = arith.mulf %179, %145 : vector<8x256xf32>
    %181 = arith.addf %177, %180 : vector<8x256xf32>
    %182 = vector.extract_strided_slice %146 {offsets = [0, 8], sizes = [8, 1], strides = [1, 1]} : vector<8x9xf32> to vector<8x1xf32>
    %183 = vector.broadcast %182 : vector<8x1xf32> to vector<8x256xf32>
    %184 = arith.mulf %183, %152 : vector<8x256xf32>
    %185 = arith.addf %181, %184 : vector<8x256xf32>
    %c16_i32_47 = arith.constant 16 : i32
    %186 = tpu.dynamic_rotate %163 by %c16_i32_47 dim 1 : vector<8x256xf32>, i32 -> vector<8x256xf32>
    %187 = vector.broadcast %17 : vector<1x256xf32> to vector<8x256xf32>
    %188 = arith.mulf %187, %186 : vector<8x256xf32>
    %189 = arith.addf %174, %188 : vector<8x256xf32>
    %c240_i32_48 = arith.constant 240 : i32
    %190 = tpu.dynamic_rotate %185 by %c240_i32_48 dim 1 : vector<8x256xf32>, i32 -> vector<8x256xf32>
    %191 = vector.broadcast %22 : vector<1x256xf32> to vector<8x256xf32>
    %192 = arith.mulf %191, %190 : vector<8x256xf32>
    %193 = arith.addf %189, %192 : vector<8x256xf32>
    %194 = vector.broadcast %35 : vector<8x1xf32> to vector<8x256xf32>
    %195 = arith.addf %193, %194 : vector<8x256xf32>
    %cst_49 = arith.constant dense<0.000000e+00> : vector<8x256xf32>
    %196 = tpu.matmul %27, %195, %cst_49 {dimension_numbers = #tpu.dot_dimension_numbers<[1], [0], [0], [1], [0, 0, 1, 1], [], []>} : vector<8x8xf32>, vector<8x256xf32>, vector<8x256xf32> -> vector<8x256xf32>
    %197 = vector.broadcast %36 : vector<8x1xf32> to vector<8x256xf32>
    %198 = arith.addf %196, %197 : vector<8x256xf32>
    %c0_50 = arith.constant 0 : index
    %c0_51 = arith.constant 0 : index
    %199 = vector.load %arg5[%c0_50, %c0_51] : memref<8x256xf32, #tpu.memory_space<vmem>>, vector<8x256xf32>
    tpu.vector_store %arg5[%c0_50, %c0_51], %198 {strides = array<i32>} : memref<8x256xf32, #tpu.memory_space<vmem>>, vector<8x256xf32>,
    return
  }
}

module attributes {stable_mosaic.version = 11 : i64} {
  func.func @freq_kernel(%arg0: memref<16x256xf32, #tpu.memory_space<vmem>>, %arg1: memref<16x32xf32, #tpu.memory_space<vmem>>, %arg2: memref<16x2xf32, #tpu.memory_space<vmem>>, %arg3: memref<16x256xf32, #tpu.memory_space<vmem>>) attributes {dimension_semantics = [], scalar_prefetch = 0 : i64, scratch_operands = 0 : i64, tpu.core_type = #tpu.core_type<tc>} {
    %c0 = arith.constant 0 : index
    %c0_0 = arith.constant 0 : index
    %0 = vector.load %arg1[%c0, %c0_0] : memref<16x32xf32, #tpu.memory_space<vmem>>, vector<16x16xf32>
    %c0_1 = arith.constant 0 : index
    %c16 = arith.constant 16 : index
    %1 = vector.load %arg1[%c0_1, %c16] : memref<16x32xf32, #tpu.memory_space<vmem>>, vector<16x16xf32>
    %c0_2 = arith.constant 0 : index
    %c0_3 = arith.constant 0 : index
    %2 = vector.load %arg2[%c0_2, %c0_3] : memref<16x2xf32, #tpu.memory_space<vmem>>, vector<16x1xf32>
    %c0_4 = arith.constant 0 : index
    %c1 = arith.constant 1 : index
    %3 = vector.load %arg2[%c0_4, %c1] : memref<16x2xf32, #tpu.memory_space<vmem>>, vector<16x1xf32>
    %c0_5 = arith.constant 0 : index
    %c0_6 = arith.constant 0 : index
    %4 = vector.load %arg0[%c0_5, %c0_6] : memref<16x256xf32, #tpu.memory_space<vmem>>, vector<16x256xf32>
    %cst = arith.constant dense<0.000000e+00> : vector<16x256xf32>
    %5 = tpu.matmul %0, %4, %cst {dimension_numbers = #tpu.dot_dimension_numbers<[1], [0], [0], [1], [0, 0, 1, 1], [], []>} : vector<16x16xf32>, vector<16x256xf32>, vector<16x256xf32> -> vector<16x256xf32>
    %6 = vector.broadcast %2 : vector<16x1xf32> to vector<16x256xf32>
    %7 = arith.addf %5, %6 : vector<16x256xf32>
    %cst_7 = arith.constant 0.000000e+00 : f32
    %8 = vector.broadcast %cst_7 : f32 to vector<16x256xf32>
    %9 = arith.cmpf oge, %7, %8 : vector<16x256xf32>
    %cst_8 = arith.constant 1.000000e-01 : f32
    %10 = vector.broadcast %cst_8 : f32 to vector<16x256xf32>
    %11 = arith.mulf %10, %7 : vector<16x256xf32>
    %12 = arith.select %9, %7, %11 : vector<16x256xi1>, vector<16x256xf32>
    %cst_9 = arith.constant dense<0.000000e+00> : vector<16x256xf32>
    %13 = tpu.matmul %1, %12, %cst_9 {dimension_numbers = #tpu.dot_dimension_numbers<[1], [0], [0], [1], [0, 0, 1, 1], [], []>} : vector<16x16xf32>, vector<16x256xf32>, vector<16x256xf32> -> vector<16x256xf32>
    %14 = vector.broadcast %3 : vector<16x1xf32> to vector<16x256xf32>
    %15 = arith.addf %13, %14 : vector<16x256xf32>
    %16 = vector.extract_strided_slice %15 {offsets = [0, 0], sizes = [8, 256], strides = [1, 1]} : vector<16x256xf32> to vector<8x256xf32>
    %17 = vector.extract_strided_slice %15 {offsets = [8, 0], sizes = [8, 256], strides = [1, 1]} : vector<16x256xf32> to vector<8x256xf32>
    %18 = math.cos %17 : vector<8x256xf32>
    %19 = arith.mulf %16, %18 : vector<8x256xf32>
    %c0_10 = arith.constant 0 : index
    %c0_11 = arith.constant 0 : index
    %20 = vector.load %arg3[%c0_10, %c0_11] : memref<16x256xf32, #tpu.memory_space<vmem>>, vector<8x256xf32>
    tpu.vector_store %arg3[%c0_10, %c0_11], %19 {strides = array<i32>} : memref<16x256xf32, #tpu.memory_space<vmem>>, vector<8x256xf32>,
    %21 = math.sin %17 : vector<8x256xf32>
    %22 = arith.mulf %16, %21 : vector<8x256xf32>
    %c8 = arith.constant 8 : index
    %c0_12 = arith.constant 0 : index
    %23 = vector.load %arg3[%c8, %c0_12] : memref<16x256xf32, #tpu.memory_space<vmem>>, vector<8x256xf32>
    tpu.vector_store %arg3[%c8, %c0_12], %22 {strides = array<i32>} : memref<16x256xf32, #tpu.memory_space<vmem>>, vector<8x256xf32>,
    return
  }
}

module attributes {stable_mosaic.version = 11 : i64} {
  func.func @merge_kernel(%arg0: memref<8x256xf32, #tpu.memory_space<vmem>>, %arg1: memref<8x256xf32, #tpu.memory_space<vmem>>, %arg2: memref<16x256xf32, #tpu.memory_space<vmem>>, %arg3: memref<16x17xf32, #tpu.memory_space<vmem>>, %arg4: memref<16x256xf32, #tpu.memory_space<vmem>>) attributes {dimension_semantics = [], scalar_prefetch = 0 : i64, scratch_operands = 0 : i64, tpu.core_type = #tpu.core_type<tc>} {
    %c0 = arith.constant 0 : index
    %c0_0 = arith.constant 0 : index
    %0 = vector.load %arg3[%c0, %c0_0] : memref<16x17xf32, #tpu.memory_space<vmem>>, vector<16x8xf32>
    %c0_1 = arith.constant 0 : index
    %c8 = arith.constant 8 : index
    %1 = vector.load %arg3[%c0_1, %c8] : memref<16x17xf32, #tpu.memory_space<vmem>>, vector<16x8xf32>
    %c0_2 = arith.constant 0 : index
    %c16 = arith.constant 16 : index
    %2 = vector.load %arg3[%c0_2, %c16] : memref<16x17xf32, #tpu.memory_space<vmem>>, vector<16x1xf32>
    %c0_3 = arith.constant 0 : index
    %c0_4 = arith.constant 0 : index
    %3 = vector.load %arg2[%c0_3, %c0_4] : memref<16x256xf32, #tpu.memory_space<vmem>>, vector<16x256xf32>
    %c0_5 = arith.constant 0 : index
    %c0_6 = arith.constant 0 : index
    %4 = vector.load %arg0[%c0_5, %c0_6] : memref<8x256xf32, #tpu.memory_space<vmem>>, vector<8x256xf32>
    %cst = arith.constant dense<0.000000e+00> : vector<16x256xf32>
    %5 = tpu.matmul %0, %4, %cst {dimension_numbers = #tpu.dot_dimension_numbers<[1], [0], [0], [1], [0, 0, 1, 1], [], []>} : vector<16x8xf32>, vector<8x256xf32>, vector<16x256xf32> -> vector<16x256xf32>
    %6 = arith.addf %3, %5 : vector<16x256xf32>
    %c0_7 = arith.constant 0 : index
    %c0_8 = arith.constant 0 : index
    %7 = vector.load %arg1[%c0_7, %c0_8] : memref<8x256xf32, #tpu.memory_space<vmem>>, vector<8x256xf32>
    %cst_9 = arith.constant dense<0.000000e+00> : vector<16x256xf32>
    %8 = tpu.matmul %1, %7, %cst_9 {dimension_numbers = #tpu.dot_dimension_numbers<[1], [0], [0], [1], [0, 0, 1, 1], [], []>} : vector<16x8xf32>, vector<8x256xf32>, vector<16x256xf32> -> vector<16x256xf32>
    %9 = arith.addf %6, %8 : vector<16x256xf32>
    %10 = vector.broadcast %2 : vector<16x1xf32> to vector<16x256xf32>
    %11 = arith.addf %9, %10 : vector<16x256xf32>
    %c0_10 = arith.constant 0 : index
    %c0_11 = arith.constant 0 : index
    %12 = vector.load %arg4[%c0_10, %c0_11] : memref<16x256xf32, #tpu.memory_space<vmem>>, vector<16x256xf32>
    tpu.vector_store %arg4[%c0_10, %c0_11], %11 {strides = array<i32>} : memref<16x256xf32, #tpu.memory_space<vmem>>, vector<16x256xf32>,
    return
  }
}

</mosaic_0001>

<bundles_post_ra>
// kernel: res_four_forward.3
= control target key start
LH: loop header
LB: loop body
LE: loop exit
PB: predicated region body
PF: predicated region fallthrough
CT: control target
= control target key end

     0   :  { %v1051_v3 = vmov 0.0   ;;  %vm49_vm0 = vcmask 130048   ;;  %v1052_v15 = vmov 0   ;;  %v1053_v18 = vmov 1   ;;  %s1062_s9 = smov 1   ;;  %s1064_s10 = smov 16   ;;  %s1327_s0 = inlined_call_operand.vmem [shape: f32[16,256], index: 0, kind: input, shape index: {}]   ;;  %s1328_s1 = inlined_call_operand.vmem [shape: f32[16,56], index: 1, kind: input, shape index: {}]   ;;  %s1329_s2 = inlined_call_operand.vmem [shape: f32[16,9], index: 2, kind: input, shape index: {}]   ;;  %s1330_s3 = inlined_call_operand.vmem [shape: f32[8,18], index: 3, kind: input, shape index: {}]   ;;  %s1331_s4 = inlined_call_operand.vmem [shape: f32[8,256], index: 4, kind: output, shape index: {0}]   ;;  %s1332_s5 = inlined_call_operand.vmem [shape: f32[8,256], index: 5, kind: output, shape index: {1}]  }
   0x1   :  { %v46_v0 = vld [vmem:[%s1327_s0 + $0x8] sm:$0xff]  ;;  %v48_v1 = vld [vmem:[%s1327_s0 + $0x18] sm:$0xff]  ;;  %v45_v2 = vld [vmem:[%s1327_s0] sm:$0xff]  ;;  %120 = vmatprep.mubr.f32.mxu0 %v1051_v3  ;;  %211 = vmatprep.mubr.f32.mxu1 %v1051_v3  ;;  %v1055_v37 = vmov 2   ;;  %v1056_v39 = vmov 7   ;;  %s1065_s11 = smov 96  }
   0x2   :  { %v963_v4 = vpack.c.bf16 %v48_v1, %v46_v0  ;;  %v47_v5 = vld [vmem:[%s1327_s0 + $0x10] sm:$0xff]  ;;  %v1124_v7 = vld [vmem:[%s1328_s1] sm:$0xff]  ;;  %v41_v8 = vld [vmem:[%s1328_s1 + $0x8] sm:$0xff]  ;;  %1002 = vset.pattern.permute.xlu1 %v1052_v15  ;;  %1001 = vset.pattern.permute.xlu0 %v1052_v15  ;;  %s1066_s12 = smov 88   ;;  %vm492_vm11 = vcmask 64512   ;;  %s1076_s13 = smov 80  }
   0x3   :  { %v965_v6 = vpack.c.bf16 %v47_v5, %v45_v2  ;;  %v43_v16 = vld [vmem:[%s1329_s2 + $0x8] sm:$0xff]  ;;  %v1140_v17 = vld [vmem:[%s1329_s2] sm:$0xff]  ;;  %s1054_s2 = smov 112  }
   0x4   :  { %964 = vmatprep.subr.bf16.mxu0 %v963_v4  ;;  %245 = vperm.xlu1 %1002, %v43_v16   ;;  %v1156_v38 = vld [vmem:[%s1330_s3] sm:$0xff]  ;;  %v1058_v4 = vmov 8   ;;  %s1061_s3 = smov 127  }
   0x5   :  { %966 = vmatpush1.bf16.msra.mxu0 %v965_v6  ;;  %v1060_v6 = vmov 4  }
   0x8   :  { %949 = vmatmul.mubr.msk.f32.vlgmr.msra.gmra.mrb[0].mxu0 %vm49_vm0, %v1124_v7  ;;  %1003 = vset.pattern.permute.xlu1 %v1053_v18 }
   0x9   :  { %126 = vmatprep.mubr.f32.mxu0 %v1051_v3  ;;  %253 = vperm.xlu1 %1003, %v1140_v17  }
   0xc   :  { %950 = vmatmul.mubr.msk.f32.gmra.mrb[2].mxu0 %vm49_vm0, %v41_v8 }
   0xd   :  { %344 = vmatprep.mubr.f32.mxu0 %v1051_v3 }
  0x83   :  { %v246_v40 = vpop.permute.xlu1 %245 }
  0x88   :  { %v254_v41 = vpop.permute.xlu1 %253 }
  0xdb   :  { %v122_v9 = vpop.f32.mrb[0].mxu0 }
  0xdc   :  { %v124_v10 = vpop.f32.mrb[1].mxu0 }
  0xdd   :  { %v133_v11 = vadd.f32 %v124_v10, %v122_v9 }
  0xdf   :  { %134 = vadd.xlane.f32.xlu0 %v133_v11  ;;  %v128_v12 = vpop.f32.mrb[2].mxu0 }
  0xe0   :  { %v130_v13 = vpop.f32.mrb[3].mxu0 }
  0xe1   :  { %v136_v14 = vadd.f32 %v130_v13, %v128_v12 }
  0xe3   :  { %137 = vadd.xlane.f32.xlu0 %v136_v14 }
  0xf9   :  { %240 = vperm.xlu0 %1001, %v1140_v17  }
 0x16c   :  { %v135_v19 = vpop.xlane.xlu0 %134 }
 0x16d   :  { %v139_v20 = vsub.f32 %v45_v2, %v135_v19  ;;  %v140_v21 = vsub.f32 %v46_v0, %v135_v19  ;;  %v1057_v2 = vmov 6  }
 0x16e   :  { %1007 = vset.pattern.permute.xlu0 %v1057_v2 }
 0x16f   :  { %v144_v25 = vmul.f32 %v140_v21, %v140_v21  ;;  %v143_v27 = vmul.f32 %v139_v20, %v139_v20  ;;  %437 = vperm.xlu0 %1007, %v1156_v38  }
 0x170   :  { %v138_v22 = vpop.xlane.xlu0 %137 }
 0x171   :  { %v141_v23 = vsub.f32 %v47_v5, %v138_v22  ;;  %v142_v24 = vsub.f32 %v48_v1, %v138_v22  ;;  %v1059_v5 = vmov 3  }
 0x173   :  { %v146_v26 = vmul.f32 %v142_v24, %v142_v24  ;;  %v145_v28 = vmul.f32 %v141_v23, %v141_v23  ;;  %1010 = vset.pattern.permute.xlu0 %v1058_v4 }
 0x174   :  { %451 = vperm.xlu0 %1010, %v1156_v38  }
 0x175   :  { %v967_v29 = vpack.c.bf16 %v146_v26, %v144_v25  ;;  %v969_v30 = vpack.c.bf16 %v145_v28, %v143_v27  ;;  %v1063_v26 = vmov 5  }
 0x177   :  { %968 = vmatprep.subr.bf16.mxu1 %v967_v29  ;;  %v19_v29 = vlaneseq }
 0x178   :  { %970 = vmatpush1.bf16.msra.mxu1 %v969_v30  ;;  %v241_v49 = vpop.permute.xlu0 %240  ;;  %1011 = vset.pattern.permute.xlu0 %v1059_v5 }
 0x179   :  { %v1192_v30 = vand.u32 127, %v19_v29 }
 0x17b   :  { %951 = vmatmul.mubr.msk.f32.vlgmr.msra.gmra.mrb[0].mxu1 %vm49_vm0, %v1124_v7  ;;  %vm377_vm3 = vcmp.lt.s32.totalorder %v1192_v30, 1  ;;  %vm386_vm6 = vcmp.lt.s32.totalorder %v1192_v30, 127  ;;  %vm32_vm7 = vcmp.ge.s32.totalorder %v1192_v30, 16  ;;  %vm462_vm8 = vcmp.lt.s32.totalorder %v1192_v30, 16 }
 0x17c   :  { %217 = vmatprep.mubr.f32.mxu1 %v1051_v3  ;;  %vm473_vm10 = vcmp.lt.s32.totalorder %v1192_v30, 112 }
 0x17f   :  { %952 = vmatmul.mubr.msk.f32.gmra.mrb[2].mxu1 %vm49_vm0, %v41_v8 }
 0x180   :  { %559 = vmatprep.mubr.f32.mxu1 %v1051_v3 }
 0x24e   :  { %v213_v31 = vpop.f32.mrb[0].mxu1 }
 0x24f   :  { %v215_v32 = vpop.f32.mrb[1].mxu1 }
 0x250   :  { %v224_v33 = vadd.f32 %v215_v32, %v213_v31  ;;  %v1195_v32 = vadd.s32 128, %v1192_v30 }
 0x252   :  { %225 = vadd.xlane.f32.xlu1 %v224_v33  ;;  %v219_v34 = vpop.f32.mrb[2].mxu1  ;;  %vm37_vm9 = vcmp.lt.s32.totalorder %v1195_v32, 240 }
 0x253   :  { %v221_v35 = vpop.f32.mrb[3].mxu1 }
 0x254   :  { %v227_v36 = vadd.f32 %v221_v35, %v219_v34  ;;  %v438_v34 = vpop.permute.xlu0 %437  ;;  %v22_v35 = vand.u32 15, %v1192_v30 }
 0x256   :  { %228 = vadd.xlane.f32.xlu1 %v227_v36  ;;  %v23_v36 = vand.u32 15, %v1195_v32  ;;  %vm24_vm1 = vcmp.ge.s32.totalorder %v22_v35, 1  ;;  %vm28_vm4 = vcmp.le.s32.totalorder %v22_v35, 14 }
 0x258   :  { %vm25_vm2 = vcmp.ge.s32.totalorder %v23_v36, 1  ;;  %vm29_vm5 = vcmp.le.s32.totalorder %v23_v36, 14 }
 0x267   :  { %257 = vperm.xlu1 %1003, %v43_v16  }
 0x26b   :  { %272 = vrot.lane.b32.xlu1 %v1124_v7, %s1054_s2 }
 0x26c   :  { %1004 = vset.pattern.permute.xlu1 %v1055_v37 }
 0x26f   :  { %274 = vrot.lane.b32.xlu1 %v41_v8, %s1054_s2 }
 0x273   :  { %269 = vperm.xlu1 %1004, %v43_v16  }
 0x277   :  { %1005 = vset.pattern.permute.xlu1 %v1052_v15 }
 0x278   :  { %393 = vperm.xlu1 %1005, %v1156_v38  }
 0x27c   :  { %1006 = vset.pattern.permute.xlu1 %v1053_v18 }
 0x27d   :  { %399 = vperm.xlu1 %1006, %v1156_v38  }
 0x281   :  { %1008 = vset.pattern.permute.xlu1 %v1056_v39 }
 0x282   :  { %443 = vperm.xlu1 %1008, %v1156_v38  }
 0x286   :  { %1009 = vset.pattern.permute.xlu1 %v1055_v37 }
 0x287   :  { %407 = vperm.xlu1 %1009, %v1156_v38  }
 0x28b   :  { %1012 = vset.pattern.permute.xlu1 %v1060_v6 }
 0x2df   :  { %v226_v42 = vpop.xlane.xlu1 %225 }
 0x2e0   :  { %v230_v43 = vadd.f32 1e-06, %v226_v42  ;;  %v1201_v42 = vsel %vm24_vm1, 1.0, %v1051_v3 }
 0x2e2   :  { %1029 = vrsqrt.f32 %v230_v43  ;;  %v1204_v43 = vsel %vm25_vm2, 1.0, %v1051_v3 }
 0x2e3   :  { %v229_v44 = vpop.xlane.xlu1 %228 }
 0x2e4   :  { %v231_v45 = vadd.f32 1e-06, %v229_v44 }
 0x2e6   :  { %1031 = vrsqrt.f32 %v231_v45 }
 0x2e7   :  { %v258_v57 = vpop.permute.xlu1 %257 }
 0x2eb   :  { %v273_v0 = vpop.permute.xlu1 %272 }
 0x2ec   :  { %v1030_v46 = vpop.eup %1029 }
 0x2ed   :  { %v234_v47 = vmul.f32 %v1030_v46, %v139_v20  ;;  %v235_v48 = vmul.f32 %v1030_v46, %v140_v21 }
 0x2ef   :  { %v248_v53 = vmul.f32 %v241_v49, %v234_v47  ;;  %v249_v54 = vmul.f32 %v241_v49, %v235_v48  ;;  %v275_v1 = vpop.permute.xlu1 %274  ;;  %v1214_v49 = vsel %vm28_vm4, 1.0, %v1051_v3 }
 0x2f0   :  { %v1032_v50 = vpop.eup %1031 }
 0x2f1   :  { %v236_v51 = vmul.f32 %v1032_v50, %v141_v23  ;;  %v237_v52 = vmul.f32 %v1032_v50, %v142_v24  ;;  %v260_v60 = vadd.f32 %v254_v41, %v248_v53  ;;  %v261_v61 = vadd.f32 %v254_v41, %v249_v54  ;;  %v452_v41 = vpop.permute.xlu0 %451 }
 0x2f2   :  { %v1217_v50 = vsel %vm29_vm5, 1.0, %v1051_v3 }
 0x2f3   :  { %v250_v55 = vmul.f32 %v246_v40, %v236_v51  ;;  %v251_v56 = vmul.f32 %v246_v40, %v237_v52  ;;  %v270_v10 = vpop.permute.xlu1 %269 }
 0x2f5   :  { %v262_v58 = vadd.f32 %v258_v57, %v250_v55  ;;  %v263_v59 = vadd.f32 %v258_v57, %v251_v56 }
 0x2f7   :  { %v973_v62 = vpack.c.bf16 %v262_v58, %v260_v60  ;;  %v971_v63 = vpack.c.bf16 %v263_v59, %v261_v61  ;;  %v394_v27 = vpop.permute.xlu1 %393 }
 0x2f9   :  { %972 = vmatprep.subr.bf16.mxu0 %v971_v63 }
 0x2fa   :  { %974 = vmatpush1.bf16.msra.mxu0 %v973_v62 }
 0x2fc   :  { %v400_v28 = vpop.permute.xlu1 %399 }
 0x2fd   :  { %953 = vmatmul.mubr.msk.f32.vlgmr.msra.gmra.mrb[4].mxu0 %vm49_vm0, %v273_v0 }
 0x2fe   :  { %350 = vmatprep.mubr.f32.mxu0 %v1051_v3 }
 0x301   :  { %954 = vmatmul.mubr.msk.f32.gmra.mrb[6].mxu0 %vm49_vm0, %v275_v1  ;;  %v444_v31 = vpop.permute.xlu1 %443 }
 0x302   :  { %712 = vmatprep.mubr.f32.mxu0 %v1051_v3 }
 0x306   :  { %v408_v33 = vpop.permute.xlu1 %407 }
 0x3d0   :  { %v1171_v8 = vpop.f32.mrb[4].mxu0 }
 0x3d1   :  { %v1173_v9 = vpop.f32.mrb[5].mxu0 }
 0x3d4   :  { %v352_v11 = vpop.f32.mrb[6].mxu0 }
 0x3d5   :  { %v353_v12 = vadd.f32 %v352_v11, %v270_v10  ;;  %v354_v13 = vpop.f32.mrb[7].mxu0 }
 0x3d6   :  { %v355_v14 = vadd.f32 %v354_v13, %v270_v10 }
 0x3d7   :  { %v955_v15 = vmul.f32 -1.442695, %v353_v12 }
 0x3d8   :  { %v956_v16 = vmul.f32 -1.442695, %v355_v14 }
 0x3d9   :  { %1033 = vpow2.f32 %v955_v15 }
 0x3da   :  { %1035 = vpow2.f32 %v956_v16 }
 0x3e3   :  { %v1034_v18 = vpop.eup %1033 }
 0x3e4   :  { %v1036_v19 = vpop.eup %1035  ;;  %v365_v20 = vadd.f32 1.0, %v1034_v18 }
 0x3e5   :  { %v366_v21 = vadd.f32 1.0, %v1036_v19 }
 0x3e6   :  { %1037 = vrcp.f32 %v365_v20 }
 0x3e7   :  { %1039 = vrcp.f32 %v366_v21 }
 0x3f0   :  { %v1038_v22 = vpop.eup %1037 }
 0x3f1   :  { %v1175_v23 = vmul.f32 %v1038_v22, %v353_v12  ;;  %v1040_v24 = vpop.eup %1039 }
 0x3f2   :  { %v1181_v25 = vmul.f32 %v1040_v24, %v355_v14 }
 0x3f3   :  { %382 = vrot.lane.b32.xlu0 %v1175_v23, %s1061_s3  ;;  %373 = vrot.lane.b32.xlu1 %v1175_v23, %s1062_s9  ;;  %v402_v57 = vmul.f32 %v400_v28, %v1175_v23  ;;  %v446_v5 = vmul.f32 %v444_v31, %v1175_v23 }
 0x3f4   :  { %v403_v58 = vmul.f32 %v400_v28, %v1181_v25 }
 0x3f7   :  { %415 = vperm.xlu0 %1011, %v1156_v38   ;;  %375 = vrot.lane.b32.xlu1 %v1181_v25, %s1062_s9 }
 0x3fb   :  { %384 = vrot.lane.b32.xlu1 %v1181_v25, %s1061_s3  ;;  %481 = vperm.xlu0 %1011, %v1140_v17  }
 0x3ff   :  { %421 = vperm.xlu1 %1012, %v1156_v38   ;;  %1014 = vset.pattern.permute.xlu0 %v1060_v6  ;;  %v447_v6 = vmul.f32 %v444_v31, %v1181_v25 }
 0x403   :  { %1013 = vset.pattern.permute.xlu1 %v1063_v26 }
 0x404   :  { %429 = vperm.xlu1 %1013, %v1156_v38  }
 0x408   :  { %1016 = vset.pattern.permute.xlu1 %v1057_v2 }
 0x465   :  { %v374_v40 = vpop.permute.xlu1 %373  ;;  %v383_v51 = vpop.permute.xlu0 %382 }
 0x469   :  { %v376_v44 = vpop.permute.xlu1 %375 }
 0x46a   :  { %v378_v45 = vsel %vm377_vm3, %v374_v40, %v376_v44  ;;  %v379_v46 = vsel %vm377_vm3, %v376_v44, %v374_v40 }
 0x46b   :  { %v380_v47 = vmul.f32 %v379_v46, %v1201_v42  ;;  %v381_v48 = vmul.f32 %v378_v45, %v1204_v43  ;;  %v1252_v46 = vsel %vm37_vm9, 1.0, %v1051_v3 }
 0x46d   :  { %v396_v52 = vmul.f32 %v394_v27, %v380_v47  ;;  %v397_v53 = vmul.f32 %v394_v27, %v381_v48  ;;  %v385_v54 = vpop.permute.xlu1 %384  ;;  %v440_v61 = vmul.f32 %v438_v34, %v380_v47  ;;  %v441_v62 = vmul.f32 %v438_v34, %v381_v48 }
 0x46e   :  { %v387_v55 = vsel %vm386_vm6, %v383_v51, %v385_v54  ;;  %v388_v56 = vsel %vm386_vm6, %v385_v54, %v383_v51 }
 0x46f   :  { %v389_v59 = vmul.f32 %v387_v55, %v1214_v49  ;;  %v390_v60 = vmul.f32 %v388_v56, %v1217_v50  ;;  %v405_v63 = vadd.f32 %v403_v58, %v397_v53  ;;  %v404_v1 = vadd.f32 %v402_v57, %v396_v52 }
 0x470   :  { %v449_v14 = vadd.f32 %v447_v6, %v441_v62  ;;  %v448_v15 = vadd.f32 %v446_v5, %v440_v61 }
 0x471   :  { %v411_v0 = vmul.f32 %v408_v33, %v390_v60  ;;  %v410_v2 = vmul.f32 %v408_v33, %v389_v59  ;;  %v455_v12 = vmul.f32 %v452_v41, %v390_v60  ;;  %v454_v13 = vmul.f32 %v452_v41, %v389_v59 }
 0x473   :  { %v413_v10 = vadd.f32 %v411_v0, %v405_v63  ;;  %v412_v11 = vadd.f32 %v410_v2, %v404_v1  ;;  %v457_v16 = vadd.f32 %v455_v12, %v449_v14  ;;  %v456_v18 = vadd.f32 %v454_v13, %v448_v15 }
 0x474   :  { %v1067_v15 = vmov 9  }
 0x475   :  { %460 = vrot.lane.b32.xlu0 %v413_v10, %s1064_s10  ;;  %458 = vrot.lane.b32.xlu1 %v412_v11, %s1064_s10 }
 0x476   :  { %v416_v20 = vpop.permute.xlu0 %415 }
 0x477   :  { %v418_v24 = vmul.f32 %v416_v20, %v380_v47  ;;  %v419_v27 = vmul.f32 %v416_v20, %v381_v48 }
 0x479   :  { %471 = vrot.lane.b32.xlu0 %v457_v16, %s1054_s2  ;;  %469 = vrot.lane.b32.xlu1 %v456_v18, %s1054_s2  ;;  %v1069_v16 = vmov 15   ;;  %v1070_v18 = vmov 16  }
 0x47a   :  { %v482_v40 = vpop.permute.xlu0 %481 }
 0x47d   :  { %490 = vrot.lane.b32.xlu1 %v1124_v7, %s1065_s11  ;;  %487 = vperm.xlu0 %1014, %v1140_v17  }
 0x47e   :  { %v422_v19 = vpop.permute.xlu1 %421 }
 0x47f   :  { %v424_v21 = vmul.f32 %v422_v19, %v1175_v23  ;;  %v425_v22 = vmul.f32 %v422_v19, %v1181_v25  ;;  %v1242_v23 = vsel %vm32_vm7, 1.0, %v1051_v3 }
 0x481   :  { %566 = vrot.lane.b32.xlu1 %v1124_v7, %s1066_s12  ;;  %1015 = vset.pattern.permute.xlu0 %v1063_v26  ;;  %v426_v29 = vadd.f32 %v424_v21, %v418_v24  ;;  %v427_v31 = vadd.f32 %v425_v22, %v419_v27  ;;  %v1071_v22 = vmov 11   ;;  %v1072_v24 = vmov 17  }
 0x482   :  { %v1073_v27 = vmov 12  }
 0x483   :  { %v430_v28 = vpop.permute.xlu1 %429 }
 0x484   :  { %v432_v33 = vmul.f32 %v430_v28, %v389_v59  ;;  %v433_v34 = vmul.f32 %v430_v28, %v390_v60  ;;  %v1074_v28 = vmov 13  }
 0x486   :  { %v434_v35 = vadd.f32 %v432_v33, %v426_v29  ;;  %v435_v36 = vadd.f32 %v433_v34, %v427_v31 }
 0x4e7   :  { %v459_v25 = vpop.permute.xlu1 %458  ;;  %v461_v41 = vpop.permute.xlu0 %460 }
 0x4e8   :  { %v464_v26 = vsel %vm462_vm8, %v461_v41, %v459_v25  ;;  %v463_v45 = vsel %vm462_vm8, %v459_v25, %v461_v41 }
 0x4e9   :  { %v465_v44 = vmul.f32 %v464_v26, %v1242_v23  ;;  %v468_v53 = vadd.f32 %v463_v45, %v435_v36 }
 0x4eb   :  { %v470_v47 = vpop.permute.xlu1 %469  ;;  %v467_v48 = vadd.f32 %v465_v44, %v434_v35  ;;  %v472_v51 = vpop.permute.xlu0 %471 }
 0x4ec   :  { %v474_v52 = vsel %vm473_vm10, %v470_v47, %v472_v51  ;;  %v475_v32 = vsel %vm473_vm10, %v472_v51, %v470_v47 }
 0x4ed   :  { %v477_v54 = vmul.f32 %v475_v32, %v1252_v46  ;;  %v478_v55 = vadd.f32 %v474_v52, %v467_v48 }
 0x4ef   :  { %v479_v56 = vadd.f32 %v477_v54, %v468_v53  ;;  %v484_v58 = vadd.f32 %v482_v40, %v478_v55  ;;  %v491_v59 = vpop.permute.xlu1 %490 }
 0x4f1   :  { %v485_v57 = vadd.f32 %v482_v40, %v479_v56 }
 0x4f3   :  { %495 = vmatprep.subr.mxu1 %v485_v57  ;;  %v567_v1 = vpop.permute.xlu1 %566  ;;  %v1075_v57 = vmov 14  }
 0x4f4   :  { %496 = vmatpush1.msra.mxu1 %v484_v58 }
 0x4f5   :  { %957 = vmatmul.mubr.msk.f32.vlgmr.msra.gmra.mrb[4].mxu1 %vm492_vm11, %v491_v59 }
 0x4f6   :  { %634 = vmatprep.mubr.f32.mxu1 %v1051_v3 }
 0x4fc   :  { %v488_v60 = vpop.permute.xlu0 %487 }
 0x5c8   :  { %v561_v61 = vpop.f32.mrb[4].mxu1 }
 0x5c9   :  { %v563_v62 = vpop.f32.mrb[5].mxu1  ;;  %v562_v0 = vadd.f32 %v561_v61, %v488_v60 }
 0x5ca   :  { %v564_v63 = vadd.f32 %v563_v62, %v488_v60 }
 0x5cc   :  { %570 = vmatprep.subr.mxu1 %v564_v63 }
 0x5cd   :  { %571 = vmatpush1.msra.mxu1 %v562_v0 }
 0x5ce   :  { %958 = vmatmul.mubr.msk.f32.vlgmr.msra.gmra.mrb[6].mxu1 %vm492_vm11, %v567_v1 }
 0x5cf   :  { %932 = vmatprep.mubr.f32.mxu1 %v1051_v3  ;;  %v1068_v3 = vmov 10  }
 0x6a1   :  { %v636_v2 = vpop.f32.mrb[6].mxu1 }
 0x6a2   :  { %v638_v5 = vpop.f32.mrb[7].mxu1 }
 0x6a3   :  { %v641_v6 = vadd.f32 %v638_v5, %v636_v2 }
 0x6a5   :  { %642 = vadd.xlane.f32.xlu1 %v641_v6 }
 0x6b6   :  { %733 = vperm.xlu1 %1016, %v1140_v17  }
 0x6ba   :  { %1017 = vset.pattern.permute.xlu1 %v1067_v15 }
 0x6bb   :  { %769 = vperm.xlu1 %1017, %v1156_v38  }
 0x6bf   :  { %1018 = vset.pattern.permute.xlu1 %v1068_v3 }
 0x6c0   :  { %775 = vperm.xlu1 %1018, %v1156_v38  }
 0x6c4   :  { %1019 = vset.pattern.permute.xlu1 %v1069_v16 }
 0x6c5   :  { %813 = vperm.xlu1 %1019, %v1156_v38  }
 0x6c9   :  { %1020 = vset.pattern.permute.xlu1 %v1070_v18 }
 0x6ca   :  { %819 = vperm.xlu1 %1020, %v1156_v38  }
 0x6ce   :  { %1021 = vset.pattern.permute.xlu1 %v1071_v22 }
 0x6cf   :  { %783 = vperm.xlu1 %1021, %v1156_v38  }
 0x6d3   :  { %1022 = vset.pattern.permute.xlu1 %v1072_v24 }
 0x6d4   :  { %827 = vperm.xlu1 %1022, %v1156_v38  }
 0x6d8   :  { %1023 = vset.pattern.permute.xlu1 %v1073_v27 }
 0x732   :  { %v643_v10 = vpop.xlane.xlu1 %642 }
 0x733   :  { %v644_v11 = vsub.f32 %v562_v0, %v643_v10  ;;  %v645_v12 = vsub.f32 %v564_v63, %v643_v10 }
 0x735   :  { %v646_v13 = vmul.f32 %v644_v11, %v644_v11  ;;  %v647_v14 = vmul.f32 %v645_v12, %v645_v12 }
 0x736   :  { %v734_v40 = vpop.permute.xlu1 %733 }
 0x737   :  { %648 = vmatprep.subr.mxu0 %v647_v14 }
 0x738   :  { %649 = vmatpush1.msra.mxu0 %v646_v13 }
 0x739   :  { %959 = vmatmul.mubr.msk.f32.vlgmr.msra.gmra.mrb[8].mxu0 %vm492_vm11, %v567_v1 }
 0x73a   :  { %v770_v58 = vpop.permute.xlu1 %769 }
 0x73f   :  { %v776_v59 = vpop.permute.xlu1 %775 }
 0x744   :  { %v814_v60 = vpop.permute.xlu1 %813 }
 0x749   :  { %v820_v61 = vpop.permute.xlu1 %819 }
 0x74e   :  { %v784_v62 = vpop.permute.xlu1 %783 }
 0x753   :  { %v828_v63 = vpop.permute.xlu1 %827 }
 0x80c   :  { %v714_v19 = vpop.f32.mrb[8].mxu0 }
 0x80d   :  { %v716_v20 = vpop.f32.mrb[9].mxu0 }
 0x80e   :  { %v719_v21 = vadd.f32 %v716_v20, %v714_v19 }
 0x810   :  { %720 = vadd.xlane.f32.xlu0 %v719_v21 }
 0x826   :  { %727 = vperm.xlu0 %1015, %v1140_v17  }
 0x82a   :  { %1024 = vset.pattern.permute.xlu0 %v1074_v28 }
 0x89d   :  { %v721_v29 = vpop.xlane.xlu0 %720 }
 0x89e   :  { %v722_v31 = vadd.f32 1e-06, %v721_v29 }
 0x8a0   :  { %1041 = vrsqrt.f32 %v722_v31 }
 0x8a5   :  { %v728_v34 = vpop.permute.xlu0 %727 }
 0x8aa   :  { %v1042_v33 = vpop.eup %1041 }
 0x8ab   :  { %v724_v35 = vmul.f32 %v1042_v33, %v644_v11  ;;  %v725_v36 = vmul.f32 %v1042_v33, %v645_v12 }
 0x8ad   :  { %v730_v25 = vmul.f32 %v728_v34, %v724_v35  ;;  %v731_v41 = vmul.f32 %v728_v34, %v725_v36 }
 0x8af   :  { %v736_v26 = vadd.f32 %v734_v40, %v730_v25  ;;  %v737_v44 = vadd.f32 %v734_v40, %v731_v41 }
 0x8b1   :  { %v960_v45 = vmul.f32 -1.442695, %v736_v26  ;;  %v961_v47 = vmul.f32 -1.442695, %v737_v44 }
 0x8b3   :  { %1043 = vpow2.f32 %v960_v45 }
 0x8b4   :  { %1045 = vpow2.f32 %v961_v47 }
 0x8bd   :  { %v1044_v48 = vpop.eup %1043 }
 0x8be   :  { %v1046_v51 = vpop.eup %1045  ;;  %v744_v52 = vadd.f32 1.0, %v1044_v48 }
 0x8bf   :  { %v745_v32 = vadd.f32 1.0, %v1046_v51 }
 0x8c0   :  { %1047 = vrcp.f32 %v744_v52 }
 0x8c1   :  { %1049 = vrcp.f32 %v745_v32 }
 0x8ca   :  { %v1048_v53 = vpop.eup %1047 }
 0x8cb   :  { %v1050_v54 = vpop.eup %1049  ;;  %v750_v55 = vmul.f32 %v1048_v53, %v736_v26 }
 0x8cc   :  { %v751_v56 = vmul.f32 %v1050_v54, %v737_v44 }
 0x8cd   :  { %752 = vrot.lane.b32.xlu1 %v750_v55, %s1062_s9  ;;  %v778_v13 = vmul.f32 %v776_v59, %v750_v55  ;;  %v822_v21 = vmul.f32 %v820_v61, %v750_v55 }
 0x8ce   :  { %754 = vrot.lane.b32.xlu0 %v751_v56, %s1062_s9  ;;  %v779_v14 = vmul.f32 %v776_v59, %v751_v56  ;;  %v823_v22 = vmul.f32 %v820_v61, %v751_v56 }
 0x8d1   :  { %760 = vrot.lane.b32.xlu1 %v750_v55, %s1061_s3 }
 0x8d2   :  { %762 = vrot.lane.b32.xlu0 %v751_v56, %s1061_s3 }
 0x8d5   :  { %791 = vperm.xlu1 %1023, %v1156_v38  }
 0x8d6   :  { %797 = vperm.xlu0 %1024, %v1156_v38  }
 0x8d9   :  { %1025 = vset.pattern.permute.xlu1 %v1075_v57 }
 0x8da   :  { %805 = vperm.xlu1 %1025, %v1156_v38   ;;  %1028 = vset.pattern.permute.xlu0 %v1058_v4 }
 0x8de   :  { %1026 = vset.pattern.permute.xlu1 %v1056_v39 }
 0x8df   :  { %855 = vperm.xlu1 %1026, %v1140_v17  }
 0x8e3   :  { %1027 = vset.pattern.permute.xlu1 %v1055_v37 }
 0x93f   :  { %v753_v0 = vpop.permute.xlu1 %752 }
 0x940   :  { %v755_v1 = vpop.permute.xlu0 %754 }
 0x941   :  { %v756_v2 = vsel %vm377_vm3, %v753_v0, %v755_v1  ;;  %v757_v38 = vsel %vm377_vm3, %v755_v1, %v753_v0 }
 0x942   :  { %v758_v39 = vmul.f32 %v757_v38, %v1201_v42  ;;  %v759_v4 = vmul.f32 %v756_v2, %v1204_v43 }
 0x943   :  { %v761_v5 = vpop.permute.xlu1 %760 }
 0x944   :  { %v772_v37 = vmul.f32 %v770_v58, %v758_v39  ;;  %v773_v6 = vmul.f32 %v770_v58, %v759_v4  ;;  %v763_v10 = vpop.permute.xlu0 %762  ;;  %v816_v16 = vmul.f32 %v814_v60, %v758_v39  ;;  %v817_v42 = vmul.f32 %v814_v60, %v759_v4 }
 0x945   :  { %v764_v11 = vsel %vm386_vm6, %v761_v5, %v763_v10  ;;  %v765_v12 = vsel %vm386_vm6, %v763_v10, %v761_v5 }
 0x946   :  { %v766_v15 = vmul.f32 %v764_v11, %v1214_v49  ;;  %v767_v3 = vmul.f32 %v765_v12, %v1217_v50  ;;  %v781_v18 = vadd.f32 %v779_v14, %v773_v6  ;;  %v780_v19 = vadd.f32 %v778_v13, %v772_v37 }
 0x947   :  { %v825_v31 = vadd.f32 %v823_v22, %v817_v42  ;;  %v824_v49 = vadd.f32 %v822_v21, %v816_v16 }
 0x948   :  { %v787_v43 = vmul.f32 %v784_v62, %v767_v3  ;;  %v786_v20 = vmul.f32 %v784_v62, %v766_v15  ;;  %v831_v28 = vmul.f32 %v828_v63, %v767_v3  ;;  %v830_v29 = vmul.f32 %v828_v63, %v766_v15 }
 0x94a   :  { %v789_v24 = vadd.f32 %v787_v43, %v781_v18  ;;  %v788_v27 = vadd.f32 %v786_v20, %v780_v19  ;;  %v833_v33 = vadd.f32 %v831_v28, %v825_v31  ;;  %v832_v50 = vadd.f32 %v830_v29, %v824_v49 }
 0x94c   :  { %836 = vrot.lane.b32.xlu1 %v789_v24, %s1064_s10  ;;  %834 = vrot.lane.b32.xlu0 %v788_v27, %s1064_s10 }
 0x950   :  { %846 = vrot.lane.b32.xlu1 %v833_v33, %s1054_s2  ;;  %844 = vrot.lane.b32.xlu0 %v832_v50, %s1054_s2 }
 0x954   :  { %265 = vperm.xlu1 %1027, %v1140_v17   ;;  %v792_v34 = vpop.permute.xlu1 %791  ;;  %864 = vrot.lane.b32.xlu0 %v1124_v7, %s1076_s13 }
 0x955   :  { %v798_v35 = vpop.permute.xlu0 %797  ;;  %v794_v25 = vmul.f32 %v792_v34, %v758_v39  ;;  %v795_v41 = vmul.f32 %v792_v34, %v759_v4 }
 0x956   :  { %v800_v36 = vmul.f32 %v798_v35, %v750_v55  ;;  %v801_v40 = vmul.f32 %v798_v35, %v751_v56 }
 0x958   :  { %861 = vperm.xlu0 %1028, %v1140_v17   ;;  %v802_v44 = vadd.f32 %v800_v36, %v794_v25  ;;  %v803_v45 = vadd.f32 %v801_v40, %v795_v41 }
 0x959   :  { %v806_v26 = vpop.permute.xlu1 %805 }
 0x95a   :  { %v808_v47 = vmul.f32 %v806_v26, %v766_v15  ;;  %v809_v48 = vmul.f32 %v806_v26, %v767_v3 }
 0x95c   :  { %v810_v51 = vadd.f32 %v808_v47, %v802_v44  ;;  %v811_v52 = vadd.f32 %v809_v48, %v803_v45 }
 0x95e   :  { %v856_v32 = vpop.permute.xlu1 %855 }
 0x9be   :  { %v835_v53 = vpop.permute.xlu0 %834  ;;  %v837_v54 = vpop.permute.xlu1 %836 }
 0x9bf   :  { %v839_v7 = vsel %vm462_vm8, %v837_v54, %v835_v53  ;;  %v838_v56 = vsel %vm462_vm8, %v835_v53, %v837_v54 }
 0x9c0   :  { %v840_v55 = vmul.f32 %v839_v7, %v1242_v23  ;;  %v843_v61 = vadd.f32 %v838_v56, %v811_v52 }
 0x9c2   :  { %v845_v57 = vpop.permute.xlu0 %844  ;;  %v842_v17 = vadd.f32 %v840_v55, %v810_v51  ;;  %v847_v58 = vpop.permute.xlu1 %846 }
 0x9c3   :  { %v848_v59 = vsel %vm473_vm10, %v845_v57, %v847_v58  ;;  %v849_v60 = vsel %vm473_vm10, %v847_v58, %v845_v57 }
 0x9c4   :  { %v851_v62 = vmul.f32 %v849_v60, %v1252_v46  ;;  %v852_v63 = vadd.f32 %v848_v59, %v842_v17 }
 0x9c6   :  { %v853_v0 = vadd.f32 %v851_v62, %v843_v61  ;;  %v858_v2 = vadd.f32 %v856_v32, %v852_v63  ;;  %v865_v23 = vpop.permute.xlu0 %864 }
 0x9c8   :  { %v859_v1 = vadd.f32 %v856_v32, %v853_v0 }
 0x9ca   :  { %868 = vmatprep.subr.mxu1 %v859_v1 }
 0x9cb   :  { %869 = vmatpush1.msra.mxu1 %v858_v2 }
 0x9cc   :  { %962 = vmatmul.mubr.msk.f32.vlgmr.msra.gmra.mrb[8].mxu1 %vm492_vm11, %v865_v23 }
 0x9d3   :  { %v266_v38 = vpop.permute.xlu1 %265 }
 0x9d4   :  { %v347_v39 = vadd.f32 %v1171_v8, %v266_v38  ;;  %v349_v4 = vadd.f32 %v1173_v9, %v266_v38 }
 0x9d6   :  { %357 = vst [vmem:[%s1331_s4] sm:$0xff] %v347_v39  ;;  %358 = vst [vmem:[%s1331_s4 + $0x8] sm:$0xff] %v349_v4 }
 0x9d7   :  { %v862_v30 = vpop.permute.xlu0 %861 }
 0xa9f   :  { %v934_v46 = vpop.f32.mrb[8].mxu1 }
 0xaa0   :  { %v935_v5 = vadd.f32 %v934_v46, %v862_v30  ;;  %v936_v37 = vpop.f32.mrb[9].mxu1 }
 0xaa1   :  { %v937_v6 = vadd.f32 %v936_v37, %v862_v30 }
 0xaa2   :  { %939 = vst [vmem:[%s1332_s5] sm:$0xff] %v935_v5 }
 0xaa3   :  { %940 = vst [vmem:[%s1332_s5 + $0x8] sm:$0xff] %v937_v6 }

// kernel: res_four_forward.4
= control target key start
LH: loop header
LB: loop body
LE: loop exit
PB: predicated region body
PF: predicated region fallthrough
CT: control target
= control target key end

     0   :  { %v704_v3 = vmov 0.0   ;;  %v705_v4 = vmov 0   ;;  %s706_s24 = smov 112   ;;  %vm32_vm0 = vcmask 130048   ;;  %v707_v12 = vmov 1   ;;  %s842_s0 = inlined_call_operand.vmem [shape: f32[16,256], index: 0, kind: input, shape index: {}]   ;;  %s843_s1 = inlined_call_operand.vmem [shape: f32[16,32], index: 1, kind: input, shape index: {}]   ;;  %s844_s2 = inlined_call_operand.vmem [shape: f32[16,2], index: 2, kind: input, shape index: {}]   ;;  %s845_s3 = inlined_call_operand.vmem [shape: f32[16,256], index: 3, kind: output, shape index: {}]  }
   0x1   :  { %v19_v0 = vld [vmem:[%s842_s0 + $0x8] sm:$0xff]  ;;  %v21_v1 = vld [vmem:[%s842_s0 + $0x18] sm:$0xff]  ;;  %v18_v2 = vld [vmem:[%s842_s0] sm:$0xff]  ;;  %103 = vmatprep.mubr.f32.mxu0 %v704_v3  ;;  %693 = vset.pattern.permute.xlu0 %v705_v4  ;;  %v708_v62 = vmov 683565275  }
   0x2   :  { %v667_v5 = vpack.c.bf16 %v21_v1, %v19_v0  ;;  %v20_v6 = vld [vmem:[%s842_s0 + $0x10] sm:$0xff]  ;;  %v14_v7 = vld [vmem:[%s843_s1] sm:$0xff]  ;;  %208 = vmatprep.mubr.f32.mxu1 %v704_v3  ;;  %v17_v10 = vld [vmem:[%s844_s2 + $0x8] sm:$0xff]  ;;  %695 = vset.pattern.permute.xlu1 %v707_v12  ;;  %v710_v4 = vmov 2131351028  }
   0x3   :  { %v669_v8 = vpack.c.bf16 %v20_v6, %v18_v2  ;;  %v16_v9 = vld [vmem:[%s844_s2] sm:$0xff]  ;;  %136 = vrot.lane.b32.xlu1 %v14_v7, %s706_s24  ;;  %v15_v11 = vld [vmem:[%s843_s1 + $0x8] sm:$0xff]  ;;  %v709_v2 = vmov 2475754826   ;;  %v711_v6 = vmov 2102212464  }
   0x4   :  { %668 = vmatprep.subr.bf16.mxu0 %v667_v5  ;;  %24 = vperm.xlu0 %693, %v16_v9  }
   0x5   :  { %670 = vmatpush1.bf16.msra.mxu0 %v669_v8  ;;  %v712_v8 = vmov 920167782  }
   0x7   :  { %138 = vrot.lane.b32.xlu1 %v15_v11, %s706_s24 }
   0x8   :  { %647 = vmatmul.mubr.msk.f32.vlgmr.msra.gmra.mrb[0].mxu0 %vm32_vm0, %v14_v7  ;;  %29 = vperm.xlu0 %693, %v17_v10  }
   0x9   :  { %109 = vmatprep.mubr.f32.mxu0 %v704_v3 }
   0xb   :  { %129 = vperm.xlu1 %695, %v16_v9  }
   0xc   :  { %648 = vmatmul.mubr.msk.f32.gmra.mrb[2].mxu0 %vm32_vm0, %v15_v11  ;;  %694 = vset.pattern.permute.xlu0 %v707_v12 }
   0xd   :  { %133 = vperm.xlu0 %694, %v17_v10  }
  0x75   :  { %v137_v33 = vpop.permute.xlu1 %136 }
  0x79   :  { %v139_v34 = vpop.permute.xlu1 %138 }
  0x83   :  { %v25_v13 = vpop.permute.xlu0 %24 }
  0x87   :  { %v30_v18 = vpop.permute.xlu0 %29 }
  0x8c   :  { %v134_v37 = vpop.permute.xlu0 %133 }
  0xdb   :  { %v105_v14 = vpop.f32.mrb[0].mxu0 }
  0xdc   :  { %v106_v15 = vadd.f32 %v105_v14, %v25_v13  ;;  %v107_v16 = vpop.f32.mrb[1].mxu0 }
  0xdd   :  { %v108_v17 = vadd.f32 %v107_v16, %v25_v13 }
  0xde   :  { %v120_v20 = vmul.f32 0.1, %v106_v15  ;;  %vm116_vm1 = vcmp.ge.f32.partialorder %v106_v15, 0.0 }
  0xdf   :  { %v111_v19 = vpop.f32.mrb[2].mxu0  ;;  %v121_v23 = vmul.f32 0.1, %v108_v17  ;;  %vm117_vm2 = vcmp.ge.f32.partialorder %v108_v17, 0.0 }
  0xe0   :  { %v112_v21 = vadd.f32 %v111_v19, %v30_v18  ;;  %v113_v22 = vpop.f32.mrb[3].mxu0  ;;  %v124_v27 = vsel %vm116_vm1, %v106_v15, %v120_v20  ;;  %v713_v15 = vmov 1326507024  }
  0xe1   :  { %v114_v24 = vadd.f32 %v113_v22, %v30_v18  ;;  %v125_v29 = vsel %vm117_vm2, %v108_v17, %v121_v23 }
  0xe2   :  { %v122_v25 = vmul.f32 0.1, %v112_v21  ;;  %vm118_vm3 = vcmp.ge.f32.partialorder %v112_v21, 0.0 }
  0xe3   :  { %v123_v26 = vmul.f32 0.1, %v114_v24  ;;  %vm119_vm4 = vcmp.ge.f32.partialorder %v114_v24, 0.0 }
  0xe4   :  { %v126_v28 = vsel %vm118_vm3, %v112_v21, %v122_v25 }
  0xe5   :  { %v127_v30 = vsel %vm119_vm4, %v114_v24, %v123_v26  ;;  %v673_v31 = vpack.c.bf16 %v126_v28, %v124_v27 }
  0xe6   :  { %v671_v32 = vpack.c.bf16 %v127_v30, %v125_v29 }
  0xe8   :  { %672 = vmatprep.subr.bf16.mxu1 %v671_v32 }
  0xe9   :  { %674 = vmatpush1.bf16.msra.mxu1 %v673_v31 }
  0xec   :  { %649 = vmatmul.mubr.msk.f32.vlgmr.msra.gmra.mrb[0].mxu1 %vm32_vm0, %v137_v33 }
  0xed   :  { %214 = vmatprep.mubr.f32.mxu1 %v704_v3 }
  0xf0   :  { %650 = vmatmul.mubr.msk.f32.gmra.mrb[2].mxu1 %vm32_vm0, %v139_v34 }
 0x1bf   :  { %v762_v35 = vpop.f32.mrb[0].mxu1 }
 0x1c0   :  { %v764_v36 = vpop.f32.mrb[1].mxu1 }
 0x1c3   :  { %v216_v38 = vpop.f32.mrb[2].mxu1 }
 0x1c4   :  { %v766_v39 = vadd.f32 %v216_v38, %v134_v37  ;;  %v218_v40 = vpop.f32.mrb[3].mxu1 }
 0x1c5   :  { %v768_v41 = vadd.f32 %v218_v40, %v134_v37 }
 0x1c6   :  { %v221_v42 = vand.u32 2147483647, %v766_v39  ;;  %v224_v43 = vand.u32 2139095040, %v766_v39  ;;  %vm223_vm3 = vcmp.lt.s32.totalorder %v766_v39, 0 }
 0x1c7   :  { %v327_v44 = vand.u32 2139095040, %v768_v41  ;;  %v324_v47 = vand.u32 2147483647, %v768_v41 }
 0x1c8   :  { %v225_v45 = vshrl.u32 %v224_v43, 23  ;;  %v228_v46 = vand.u32 8388607, %v221_v42  ;;  %vm222_vm4 = vcmp.le.f32.partialorder %v221_v42, 0.7853982 }
 0x1c9   :  { %v328_v48 = vshrl.u32 %v327_v44, 23  ;;  %v778_v53 = vand.u32 8388607, %v324_v47 }
 0x1ca   :  { %v651_v49 = vadd.s32 4294967169, %v225_v45  ;;  %v229_v52 = vor.u32 8388608, %v228_v46 }
 0x1cb   :  { %v655_v50 = vadd.s32 4294967169, %v328_v48  ;;  %v332_v60 = vor.u32 8388608, %v778_v53 }
 0x1cc   :  { %v231_v51 = vadd.s32 1, %v651_v49  ;;  %v780_v59 = vshll.u32 %v229_v52, 8 }
 0x1cd   :  { %v334_v54 = vadd.s32 1, %v655_v50 }
 0x1ce   :  { %vm232_vm5 = vcmp.gt.s32.totalorder %v231_v51, 0 }
 0x1cf   :  { %v233_v55 = vsel %vm232_vm5, %v231_v51, 0  ;;  %vm335_vm6 = vcmp.gt.s32.totalorder %v334_v54, 0  ;;  %vm326_vm5 = vcmp.lt.s32.totalorder %v768_v41, 0 }
 0x1d0   :  { %v234_v56 = vshrl.u32 %v233_v55, 5  ;;  %v235_v57 = vand.u32 31, %v233_v55  ;;  %v336_v58 = vsel %vm335_vm6, %v334_v54, 0  ;;  %vm325_vm6 = vcmp.le.f32.partialorder %v324_v47, 0.7853982 }
 0x1d1   :  { %v783_v0 = vshrl.u32 %v336_v58, 5  ;;  %v338_v1 = vand.u32 31, %v336_v58 }
 0x1d2   :  { %v236_v61 = vsub.s32 32, %v235_v57  ;;  %v238_v63 = vshll.u32 %v708_v62, %v235_v57  ;;  %v241_v3 = vshll.u32 %v709_v2, %v235_v57  ;;  %v244_v5 = vshll.u32 %v710_v4, %v235_v57 }
 0x1d3   :  { %v247_v7 = vshll.u32 %v711_v6, %v235_v57  ;;  %v250_v9 = vshll.u32 %v712_v8, %v235_v57  ;;  %vm253_vm7 = vcmp.lt.s32.totalorder %v234_v56, 1  ;;  %vm254_vm8 = vcmp.lt.s32.totalorder %v234_v56, 2 }
 0x1d4   :  { %v239_v10 = vshrl.u32 %v709_v2, %v236_v61  ;;  %v242_v11 = vshrl.u32 %v710_v4, %v236_v61  ;;  %v245_v12 = vshrl.u32 %v711_v6, %v236_v61  ;;  %v237_v13 = vshrl.u32 %v708_v62, %v236_v61 }
 0x1d5   :  { %v248_v14 = vshrl.u32 %v712_v8, %v236_v61  ;;  %v251_v16 = vshrl.u32 %v713_v15, %v236_v61  ;;  %v339_v20 = vsub.s32 32, %v338_v1  ;;  %vm255_vm9 = vcmp.lt.s32.totalorder %v234_v56, 3 }
 0x1d6   :  { %v240_v17 = vor.u32 %v239_v10, %v238_v63  ;;  %v243_v18 = vor.u32 %v242_v11, %v241_v3  ;;  %v246_v19 = vor.u32 %v245_v12, %v244_v5  ;;  %vm256_vm10 = vcmp.lt.s32.totalorder %v234_v56, 4 }
 0x1d7   :  { %v249_v21 = vor.u32 %v248_v14, %v247_v7  ;;  %v252_v22 = vor.u32 %v251_v16, %v250_v9  ;;  %v341_v30 = vshll.u32 %v708_v62, %v338_v1  ;;  %v342_v33 = vshrl.u32 %v709_v2, %v339_v20 }
 0x1d8   :  { %v257_v23 = vsel %vm253_vm7, %v237_v13, %v240_v17  ;;  %v258_v24 = vsel %vm256_vm10, %v246_v19, 2102212464  ;;  %v261_v25 = vsel %vm253_vm7, %v240_v17, %v243_v18  ;;  %v265_v26 = vsel %vm253_vm7, %v243_v18, %v246_v19 }
 0x1d9   :  { %v259_v27 = vsel %vm255_vm9, %v243_v18, %v258_v24  ;;  %v262_v28 = vsel %vm256_vm10, %v249_v21, 920167782  ;;  %v266_v29 = vsel %vm256_vm10, %v252_v22, 1326507024  ;;  %v344_v34 = vshll.u32 %v709_v2, %v338_v1 }
 0x1da   :  { %v263_v31 = vsel %vm255_vm9, %v246_v19, %v262_v28  ;;  %v267_v32 = vsel %vm255_vm9, %v249_v21, %v266_v29  ;;  %v260_v37 = vsel %vm254_vm8, %v257_v23, %v259_v27  ;;  %v345_v43 = vshrl.u32 %v710_v4, %v339_v20 }
 0x1db   :  { %v264_v38 = vsel %vm254_vm8, %v261_v25, %v263_v31  ;;  %v268_v40 = vsel %vm254_vm8, %v265_v26, %v267_v32  ;;  %v343_v49 = vor.u32 %v342_v33, %v341_v30  ;;  %v347_v51 = vshll.u32 %v710_v4, %v338_v1 }
 0x1dc   :  { %v792_v44 = vmul.u32.u64.low %v780_v59, %v268_v40  ;;  %v793_v45 = vmul.u32.u64.high %v780_v59, %v268_v40, %v792_v44  ;;  %v796_v46 = vmul.u32.u64.low %v780_v59, %v264_v38  ;;  %v797_v48 = vmul.u32.u64.high %v780_v59, %v264_v38, %v796_v46 }
 0x1dd   :  { %v346_v50 = vor.u32 %v345_v43, %v344_v34  ;;  %v348_v52 = vshrl.u32 %v711_v6, %v339_v20  ;;  %v350_v53 = vshll.u32 %v711_v6, %v338_v1  ;;  %v351_v54 = vshrl.u32 %v712_v8, %v339_v20 }
 0x1de   :  { %v354_v55 = vshrl.u32 %v713_v15, %v339_v20  ;;  %v372_v57 = vshll.u32 %v332_v60, 8  ;;  %v276_v56 = vmul.u32 %v780_v59, %v260_v37  ;;  %v340_v58 = vshrl.u32 %v708_v62, %v339_v20 }
 0x1df   :  { %v349_v61 = vor.u32 %v348_v52, %v347_v51  ;;  %v353_v63 = vshll.u32 %v712_v8, %v338_v1  ;;  %vm278_vm11 = vc.u32 %v793_v45, %v796_v46  ;;  %v279_v2 = vadd.s32 1, %v797_v48 }
 0x1e0   :  { %v352_v3 = vor.u32 %v351_v54, %v350_v53  ;;  %vm356_vm12 = vcmp.lt.s32.totalorder %v783_v0, 1  ;;  %vm358_vm13 = vcmp.lt.s32.totalorder %v783_v0, 3  ;;  %vm359_vm14 = vcmp.lt.s32.totalorder %v783_v0, 4 }
 0x1e1   :  { %v355_v5 = vor.u32 %v354_v55, %v353_v63  ;;  %v364_v4 = vsel %vm356_vm12, %v343_v49, %v346_v50  ;;  %v280_v60 = vsel %vm278_vm11, %v279_v2, %v797_v48  ;;  %v361_v6 = vsel %vm359_vm14, %v349_v61, 2102212464 }
 0x1e2   :  { %v365_v59 = vsel %vm359_vm14, %v352_v3, 920167782  ;;  %v368_v62 = vsel %vm356_vm12, %v346_v50, %v349_v61  ;;  %v281_v7 = vadd.s32 %v280_v60, %v276_v56  ;;  %vm357_vm15 = vcmp.lt.s32.totalorder %v783_v0, 2 }
 0x1e3   :  { %v366_v1 = vsel %vm358_vm13, %v349_v61, %v365_v59  ;;  %v369_v8 = vsel %vm359_vm14, %v355_v5, 1326507024  ;;  %v360_v9 = vsel %vm356_vm12, %v340_v58, %v343_v49  ;;  %v362_v10 = vsel %vm358_vm13, %v346_v50, %v361_v6 }
 0x1e4   :  { %v367_v11 = vsel %vm357_vm15, %v364_v4, %v366_v1  ;;  %v370_v12 = vsel %vm358_vm13, %v352_v3, %v369_v8  ;;  %v282_v13 = vadd.s32 536870912, %v281_v7  ;;  %v363_v20 = vsel %vm357_vm15, %v360_v9, %v362_v10 }
 0x1e5   :  { %v371_v14 = vsel %vm357_vm15, %v368_v62, %v370_v12  ;;  %v807_v15 = vmul.u32.u64.low %v372_v57, %v367_v11  ;;  %v808_v16 = vmul.u32.u64.high %v372_v57, %v367_v11, %v807_v15  ;;  %v379_v0 = vmul.u32 %v372_v57, %v363_v20 }
 0x1e6   :  { %v810_v17 = vmul.u32.u64.low %v372_v57, %v371_v14  ;;  %v811_v18 = vmul.u32.u64.high %v372_v57, %v371_v14, %v810_v17  ;;  %v283_v19 = vshrl.u32 %v282_v13, 30  ;;  %v277_v38 = vadd.s32 %v796_v46, %v793_v45 }
 0x1e7   :  { %v382_v22 = vadd.s32 1, %v808_v16  ;;  %vm313_vm13 = vweird.f32 %v766_v39 }
 0x1e8   :  { %v284_v21 = vshll.u32 %v283_v19, 30  ;;  %vm381_vm0 = vc.u32 %v811_v18, %v807_v15  ;;  %v380_v61 = vadd.s32 %v807_v15, %v811_v18  ;;  %v307_v46 = vsub.s32 4, %v283_v19 }
 0x1e9   :  { %v383_v24 = vsel %vm381_vm0, %v382_v22, %v808_v16 }
 0x1ea   :  { %v285_v23 = vsub.s32 %v281_v7, %v284_v21  ;;  %v384_v25 = vadd.s32 %v383_v24, %v379_v0  ;;  %v308_v7 = vsel %vm223_vm3, %v307_v46, %v283_v19 }
 0x1eb   :  { %v310_v9 = vsel %vm222_vm4, 0, %v308_v7 }
 0x1ec   :  { %v287_v26 = vsub.s32 0, %v285_v23  ;;  %v385_v27 = vadd.s32 536870912, %v384_v25  ;;  %v524_v14 = vadd.s32 3, %v310_v9  ;;  %v314_v17 = vand.u32 3, %v310_v9 }
 0x1ee   :  { %v652_v28 = vmin.u32 %v287_v26, %v285_v23  ;;  %v386_v29 = vshrl.u32 %v385_v27, 30  ;;  %v525_v18 = vand.u32 3, %v524_v14  ;;  %vm316_vm7 = vcmp.eq.s32.totalorder %v314_v17, 0 }
 0x1ef   :  { %vm319_vm8 = vcmp.eq.s32.totalorder %v314_v17, 2  ;;  %vm315_vm11 = vcmp.lt.s32.totalorder %v314_v17, 2 }
 0x1f0   :  { %v289_v30 = vclz %v652_v28  ;;  %v387_v31 = vshll.u32 %v386_v29, 30  ;;  %v410_v13 = vsub.s32 4, %v386_v29  ;;  %vm530_vm9 = vcmp.eq.s32.totalorder %v525_v18, 2 }
 0x1f1   :  { %vm527_vm10 = vcmp.eq.s32.totalorder %v525_v18, 0  ;;  %vm526_vm12 = vcmp.lt.s32.totalorder %v525_v18, 2 }
 0x1f2   :  { %v653_v32 = vadd.s32 4294967294, %v289_v30  ;;  %v388_v33 = vsub.s32 %v384_v25, %v387_v31  ;;  %v411_v16 = vsel %vm326_vm5, %v410_v13, %v386_v29 }
 0x1f3   :  { %v413_v21 = vsel %vm325_vm6, 0, %v411_v16 }
 0x1f4   :  { %vm654_vm1 = vcmp.lt.s32.totalorder %v653_v32, 0  ;;  %v390_v37 = vsub.s32 0, %v388_v33  ;;  %v628_v26 = vadd.s32 3, %v413_v21 }
 0x1f5   :  { %v292_v34 = vsel %vm654_vm1, 0, %v653_v32 }
 0x1f6   :  { %v293_v40 = vsub.s32 32, %v292_v34  ;;  %v297_v43 = vsub.s32 4294967266, %v292_v34  ;;  %v656_v44 = vmin.u32 %v390_v37, %v388_v33  ;;  %v294_v48 = vshll.u32 %v285_v23, %v292_v34  ;;  %v130_v23 = vpop.permute.xlu1 %129 }
 0x1f7   :  { %v211_v29 = vadd.f32 %v762_v35, %v130_v23 }
 0x1f8   :  { %v295_v49 = vshrl.u32 %v277_v38, %v293_v40  ;;  %v298_v50 = vadd.s32 127, %v297_v43  ;;  %v392_v51 = vclz %v656_v44  ;;  %v417_v38 = vand.u32 3, %v413_v21 }
 0x1f9   :  { %v629_v40 = vand.u32 3, %v628_v26 }
 0x1fa   :  { %v296_v52 = vor.u32 %v295_v49, %v294_v48  ;;  %v299_v53 = vshll.u32 %v298_v50, 23  ;;  %v657_v54 = vadd.s32 4294967294, %v392_v51  ;;  %vm422_vm14 = vcmp.eq.s32.totalorder %v417_v38, 2 }
 0x1fb   :  { %vm634_vm15 = vcmp.eq.s32.totalorder %v629_v40, 2  ;;  %vm419_vm0 = vcmp.eq.s32.totalorder %v417_v38, 0  ;;  %vm631_vm1 = vcmp.eq.s32.totalorder %v629_v40, 0 }
 0x1fc   :  { %v300_v55 = vor.u32 4788187, %v299_v53  ;;  %vm658_vm2 = vcmp.lt.s32.totalorder %v657_v54, 0  ;;  %v303_v56 = vcvt.s32.f32 %v296_v52  ;;  %v213_v52 = vadd.f32 %v764_v36, %v130_v23 }
 0x1fd   :  { %v395_v58 = vsel %vm658_vm2, 0, %v657_v54  ;;  %vm418_vm2 = vcmp.lt.s32.totalorder %v417_v38, 2 }
 0x1fe   :  { %v301_v57 = vand.u32 2147483647, %v300_v55  ;;  %v396_v63 = vsub.s32 32, %v395_v58  ;;  %v400_v2 = vsub.s32 4294967266, %v395_v58  ;;  %v397_v3 = vshll.u32 %v388_v33, %v395_v58 }
 0x200   :  { %v304_v45 = vmul.f32 %v303_v56, %v301_v57  ;;  %v398_v5 = vshrl.u32 %v380_v61, %v396_v63  ;;  %v401_v4 = vadd.s32 127, %v400_v2 }
 0x202   :  { %v305_v60 = vxor.u32 2147483648, %v304_v45  ;;  %v399_v6 = vor.u32 %v398_v5, %v397_v3  ;;  %v402_v59 = vshll.u32 %v401_v4, 23 }
 0x204   :  { %v306_v62 = vsel %vm223_vm3, %v305_v60, %v304_v45  ;;  %v403_v8 = vor.u32 4788187, %v402_v59  ;;  %v406_v11 = vcvt.s32.f32 %v399_v6  ;;  %vm630_vm3 = vcmp.lt.s32.totalorder %v629_v40, 2 }
 0x205   :  { %v309_v1 = vsel %vm222_vm4, %v766_v39, %v306_v62  ;;  %vm416_vm4 = vweird.f32 %v768_v41 }
 0x206   :  { %696 = vcosq.f32 %v309_v1  ;;  %v404_v10 = vand.u32 2147483647, %v403_v8 }
 0x207   :  { %698 = vsinq.f32 %v309_v1 }
 0x208   :  { %v407_v12 = vmul.f32 %v406_v11, %v404_v10 }
 0x20a   :  { %v408_v15 = vxor.u32 2147483648, %v407_v12 }
 0x20c   :  { %v409_v42 = vsel %vm326_vm5, %v408_v15, %v407_v12 }
 0x20d   :  { %v412_v19 = vsel %vm325_vm6, %v768_v41, %v409_v42 }
 0x20e   :  { %700 = vcosq.f32 %v412_v19 }
 0x20f   :  { %702 = vsinq.f32 %v412_v19 }
 0x210   :  { %v697_v20 = vpop.eup %696 }
 0x211   :  { %v699_v22 = vpop.eup %698  ;;  %v320_v0 = vxor.u32 2147483648, %v697_v20 }
 0x212   :  { %v317_v24 = vxor.u32 2147483648, %v699_v22 }
 0x213   :  { %v321_v25 = vsel %vm319_vm8, %v320_v0, %v699_v22  ;;  %v532_v47 = vsel %vm530_vm9, %v320_v0, %v699_v22 }
 0x214   :  { %v318_v27 = vsel %vm316_vm7, %v697_v20, %v317_v24  ;;  %v529_v28 = vsel %vm527_vm10, %v697_v20, %v317_v24 }
 0x215   :  { %v322_v30 = vsel %vm315_vm11, %v318_v27, %v321_v25  ;;  %v533_v31 = vsel %vm526_vm12, %v529_v28, %v532_v47 }
 0x216   :  { %v323_v32 = vsel %vm313_vm13, nan, %v322_v30  ;;  %v534_v33 = vsel %vm313_vm13, nan, %v533_v31 }
 0x217   :  { %v427_v34 = vmul.f32 %v323_v32, %v211_v29  ;;  %v639_v37 = vmul.f32 %v534_v33, %v211_v29 }
 0x218   :  { %v701_v43 = vpop.eup %700 }
 0x219   :  { %429 = vst [vmem:[%s845_s3] sm:$0xff] %v427_v34  ;;  %641 = vst [vmem:[%s845_s3 + $0x10] sm:$0xff] %v639_v37  ;;  %v703_v35 = vpop.eup %702  ;;  %v423_v44 = vxor.u32 2147483648, %v701_v43 }
 0x21a   :  { %v420_v39 = vxor.u32 2147483648, %v703_v35 }
 0x21b   :  { %v424_v48 = vsel %vm422_vm14, %v423_v44, %v703_v35  ;;  %v636_v49 = vsel %vm634_vm15, %v423_v44, %v703_v35 }
 0x21c   :  { %v421_v50 = vsel %vm419_vm0, %v701_v43, %v420_v39  ;;  %v633_v51 = vsel %vm631_vm1, %v701_v43, %v420_v39 }
 0x21d   :  { %v425_v53 = vsel %vm418_vm2, %v421_v50, %v424_v48  ;;  %v637_v54 = vsel %vm630_vm3, %v633_v51, %v636_v49 }
 0x21e   :  { %v426_v55 = vsel %vm416_vm4, nan, %v425_v53  ;;  %v638_v57 = vsel %vm416_vm4, nan, %v637_v54 }
 0x21f   :  { %v428_v56 = vmul.f32 %v426_v55, %v213_v52  ;;  %v640_v58 = vmul.f32 %v638_v57, %v213_v52 }
 0x221   :  { %430 = vst [vmem:[%s845_s3 + $0x8] sm:$0xff] %v428_v56  ;;  %642 = vst [vmem:[%s845_s3 + $0x18] sm:$0xff] %v640_v58 }

// kernel: reverse.1
= control target key start
LH: loop header
LB: loop body
LE: loop exit
PB: predicated region body
PF: predicated region fallthrough
CT: control target
= control target key end

     0   :  { %v71_v3 = vlaneseq  ;;  %v64_v9 = vld [vmem:[#allocation0 + $0x7] ss:$-1 sm:$0xff]  ;;  %v78_v12 = vld [vmem:[#allocation0 + $0x17] ss:$-1 sm:$0xff]  ;;  %s329_s0 = inlined_call_operand.vmem [shape: f32[2,4,16,7], index: 0, kind: input, shape index: {}]   ;;  %s330_s1 = inlined_call_operand.vmem [shape: f32[2,4,16,7], index: 1, kind: output, shape index: {}]  }
   0x1   :  { %v44_v0 = vld [vmem:[%s329_s0] sm:$0xff]  ;;  %v46_v1 = vld [vmem:[%s329_s0 + $0x8] sm:$0xff]  ;;  %v48_v2 = vld [vmem:[%s329_s0 + $0x10] sm:$0xff]  ;;  %v65_v10 = vrot.slane %v64_v9, 1  ;;  %v79_v14 = vrot.slane %v78_v12, 1 }
   0x2   :  { %45 = vst [vmem:[#allocation0 + $0x8] sm:$0xff] %v44_v0  ;;  %47 = vst [vmem:[#allocation0 + $0x18] sm:$0xff] %v46_v1  ;;  %v50_v4 = vld [vmem:[%s329_s0 + $0x18] sm:$0xff]  ;;  %v52_v5 = vld [vmem:[%s329_s0 + $0x20] sm:$0xff]  ;;  %v72_v11 = vshrl.u32 %v71_v3, 7 }
   0x3   :  { %49 = vst [vmem:[#allocation0 + $0x28] sm:$0xff] %v48_v2  ;;  %v54_v6 = vld [vmem:[%s329_s0 + $0x28] sm:$0xff]  ;;  %51 = vst [vmem:[#allocation0 + $0x38] sm:$0xff] %v50_v4  ;;  %v56_v7 = vld [vmem:[%s329_s0 + $0x30] sm:$0xff] }
   0x4   :  { %53 = vst [vmem:[#allocation0 + $0x48] sm:$0xff] %v52_v5  ;;  %55 = vst [vmem:[#allocation0 + $0x58] sm:$0xff] %v54_v6  ;;  %v58_v8 = vld [vmem:[%s329_s0 + $0x38] sm:$0xff]  ;;  %v92_v13 = vld [vmem:[#allocation0 + $0x27] ss:$-1 sm:$0xff]  ;;  %vm73_vm0 = vcmp.lt.s32.totalorder %v72_v11, 7 }
   0x5   :  { %57 = vst [vmem:[#allocation0 + $0x68] sm:$0xff] %v56_v7  ;;  %59 = vst [vmem:[#allocation0 + $0x78] sm:$0xff] %v58_v8  ;;  %v93_v15 = vrot.slane %v92_v13, 1  ;;  %v106_v16 = vld [vmem:[#allocation0 + $0x37] ss:$-1 sm:$0xff] }
   0x6   :  { %66 = vst [vmem:[#allocation1] sm:$0xff] %v65_v10  ;;  %v107_v17 = vrot.slane %v106_v16, 1  ;;  %v120_v18 = vld [vmem:[#allocation0 + $0x47] ss:$-1 sm:$0xff]  ;;  %v134_v19 = vld [vmem:[#allocation0 + $0x57] ss:$-1 sm:$0xff] }
   0x7   :  { %80 = vst [vmem:[#allocation1 + $0x8] sm:$0xff] %v79_v14  ;;  %94 = vst [vmem:[#allocation1 + $0x10] sm:$0xff] %v93_v15  ;;  %v121_v20 = vrot.slane %v120_v18, 1  ;;  %v135_v21 = vrot.slane %v134_v19, 1  ;;  %v148_v22 = vld [vmem:[#allocation0 + $0x67] ss:$-1 sm:$0xff] }
   0x8   :  { %v162_v23 = vld [vmem:[#allocation0 + $0x77] ss:$-1 sm:$0xff]  ;;  %108 = vst [vmem:[#allocation1 + $0x18] sm:$0xff] %v107_v17  ;;  %v149_v24 = vrot.slane %v148_v22, 1 }
   0x9   :  { %v163_v25 = vrot.slane %v162_v23, 1  ;;  %v69_v26 = vld [vmem:[#allocation0 + $0xf] ss:$-1 sm:$0xff]  ;;  %v83_v27 = vld [vmem:[#allocation0 + $0x1f] ss:$-1 sm:$0xff]  ;;  %122 = vst [vmem:[#allocation1 + $0x20] sm:$0xff] %v121_v20 }
   0xa   :  { %v97_v28 = vld [vmem:[#allocation0 + $0x2f] ss:$-1 sm:$0xff]  ;;  %136 = vst [vmem:[#allocation1 + $0x28] sm:$0xff] %v135_v21  ;;  %v70_v29 = vrot.slane %v69_v26, 1  ;;  %v84_v30 = vrot.slane %v83_v27, 1  ;;  %150 = vst [vmem:[#allocation1 + $0x30] sm:$0xff] %v149_v24 }
   0xb   :  { %v98_v31 = vrot.slane %v97_v28, 1  ;;  %v111_v32 = vld [vmem:[#allocation0 + $0x3f] ss:$-1 sm:$0xff]  ;;  %164 = vst [vmem:[#allocation1 + $0x38] sm:$0xff] %v163_v25  ;;  %v125_v34 = vld [vmem:[#allocation0 + $0x4f] ss:$-1 sm:$0xff] }
   0xc   :  { %v112_v33 = vrot.slane %v111_v32, 1  ;;  %v139_v35 = vld [vmem:[#allocation0 + $0x5f] ss:$-1 sm:$0xff]  ;;  %74 = vst.msk [vmem:[#allocation1] sm:$0xff] %vm73_vm0, %v70_v29  ;;  %88 = vst.msk [vmem:[#allocation1 + $0x8] sm:$0xff] %vm73_vm0, %v84_v30  ;;  %v126_v36 = vrot.slane %v125_v34, 1 }
   0xd   :  { %102 = vst.msk [vmem:[#allocation1 + $0x10] sm:$0xff] %vm73_vm0, %v98_v31  ;;  %v140_v37 = vrot.slane %v139_v35, 1  ;;  %v153_v38 = vld [vmem:[#allocation0 + $0x6f] ss:$-1 sm:$0xff]  ;;  %v167_v39 = vld [vmem:[#allocation0 + $0x7f] ss:$-1 sm:$0xff] }
   0xe   :  { %116 = vst.msk [vmem:[#allocation1 + $0x18] sm:$0xff] %vm73_vm0, %v112_v33  ;;  %v154_v40 = vrot.slane %v153_v38, 1  ;;  %v168_v41 = vrot.slane %v167_v39, 1  ;;  %130 = vst.msk [vmem:[#allocation1 + $0x20] sm:$0xff] %vm73_vm0, %v126_v36 }
   0xf   :  { %144 = vst.msk [vmem:[#allocation1 + $0x28] sm:$0xff] %vm73_vm0, %v140_v37 }
  0x10   :  { %158 = vst.msk [vmem:[#allocation1 + $0x30] sm:$0xff] %vm73_vm0, %v154_v40  ;;  %172 = vst.msk [vmem:[#allocation1 + $0x38] sm:$0xff] %vm73_vm0, %v168_v41 }
  0x13   :  { %v214_v42 = vld [vmem:[#allocation1] sm:$0xff]  ;;  %v216_v43 = vld [vmem:[#allocation1 + $0x8] sm:$0xff] }
  0x14   :  { %v218_v44 = vld [vmem:[#allocation1 + $0x10] sm:$0xff]  ;;  %215 = vst [vmem:[%s330_s1] sm:$0xff] %v214_v42  ;;  %217 = vst [vmem:[%s330_s1 + $0x8] sm:$0xff] %v216_v43 }
  0x15   :  { %219 = vst [vmem:[%s330_s1 + $0x10] sm:$0xff] %v218_v44  ;;  %v220_v45 = vld [vmem:[#allocation1 + $0x18] sm:$0xff]  ;;  %v222_v46 = vld [vmem:[#allocation1 + $0x20] sm:$0xff] }
  0x16   :  { %221 = vst [vmem:[%s330_s1 + $0x18] sm:$0xff] %v220_v45  ;;  %v224_v47 = vld [vmem:[#allocation1 + $0x28] sm:$0xff]  ;;  %223 = vst [vmem:[%s330_s1 + $0x20] sm:$0xff] %v222_v46 }
  0x17   :  { %225 = vst [vmem:[%s330_s1 + $0x28] sm:$0xff] %v224_v47  ;;  %v226_v48 = vld [vmem:[#allocation1 + $0x30] sm:$0xff]  ;;  %v228_v49 = vld [vmem:[#allocation1 + $0x38] sm:$0xff] }
  0x18   :  { %227 = vst [vmem:[%s330_s1 + $0x30] sm:$0xff] %v226_v48  ;;  %229 = vst [vmem:[%s330_s1 + $0x38] sm:$0xff] %v228_v49 }

// kernel: res_four_forward.5
= control target key start
LH: loop header
LB: loop body
LE: loop exit
PB: predicated region body
PF: predicated region fallthrough
CT: control target
= control target key end

     0   :  { %v241_v2 = vmov 0.0   ;;  %vm25_vm0 = vcmask 64512   ;;  %s242_s19 = smov 120   ;;  %v243_v7 = vmov 16   ;;  %s315_s3 = inlined_call_operand.vmem [shape: f32[16,17], index: 3, kind: input, shape index: {}]   ;;  %s316_s0 = inlined_call_operand.vmem [shape: f32[8,256], index: 0, kind: input, shape index: {}]   ;;  %s317_s1 = inlined_call_operand.vmem [shape: f32[8,256], index: 1, kind: input, shape index: {}]   ;;  %s318_s2 = inlined_call_operand.vmem [shape: f32[16,256], index: 2, kind: input, shape index: {}]   ;;  %s319_s4 = inlined_call_operand.vmem [shape: f32[16,256], index: 4, kind: output, shape index: {}]  }
   0x1   :  { %v17_v0 = vld [vmem:[%s315_s3] sm:$0xff]  ;;  %v24_v1 = vld [vmem:[%s316_s0 + $0x8] sm:$0xff]  ;;  %96 = vmatprep.mubr.f32.mxu1 %v241_v2  ;;  %187 = vmatprep.mubr.f32.mxu0 %v241_v2  ;;  %v21_v18 = vld [vmem:[%s318_s2 + $0x10] sm:$0xff] }
   0x2   :  { %115 = vrot.lane.b32.xlu0 %v17_v0, %s242_s19  ;;  %32 = vmatprep.subr.mxu1 %v24_v1  ;;  %v23_v3 = vld [vmem:[%s316_s0] sm:$0xff]  ;;  %v114_v4 = vld [vmem:[%s317_s1 + $0x8] sm:$0xff]  ;;  %v22_v19 = vld [vmem:[%s318_s2 + $0x18] sm:$0xff] }
   0x3   :  { %v113_v5 = vld [vmem:[%s317_s1] sm:$0xff]  ;;  %v18_v6 = vld [vmem:[%s315_s3 + $0x8] sm:$0xff]  ;;  %33 = vmatpush1.msra.mxu1 %v23_v3  ;;  %123 = vmatprep.subr.mxu0 %v114_v4 }
   0x4   :  { %224 = vmatmul.mubr.msk.f32.vlgmr.msra.gmra.mrb[0].mxu1 %vm25_vm0, %v17_v0  ;;  %124 = vmatpush1.msra.mxu0 %v113_v5  ;;  %v19_v14 = vld [vmem:[%s318_s2] sm:$0xff]  ;;  %v20_v15 = vld [vmem:[%s318_s2 + $0x8] sm:$0xff] }
   0x5   :  { %102 = vmatprep.mubr.f32.mxu1 %v241_v2  ;;  %239 = vset.pattern.permute.xlu1 %v243_v7 }
   0x6   :  { %117 = vrot.lane.b32.xlu0 %v18_v6, %s242_s19  ;;  %205 = vperm.xlu1 %239, %v17_v0  }
   0x7   :  { %240 = vset.pattern.permute.xlu0 %v243_v7 }
   0x8   :  { %225 = vmatmul.mubr.msk.f32.gmra.mrb[2].mxu1 %vm25_vm0, %v18_v6 }
   0xa   :  { %209 = vperm.xlu1 %239, %v18_v6  }
  0x74   :  { %v116_v8 = vpop.permute.xlu0 %115 }
  0x75   :  { %226 = vmatmul.mubr.msk.f32.vlgmr.msra.gmra.mrb[0].mxu0 %vm25_vm0, %v116_v8 }
  0x76   :  { %193 = vmatprep.mubr.f32.mxu0 %v241_v2 }
  0x78   :  { %v118_v9 = vpop.permute.xlu0 %117 }
  0x79   :  { %227 = vmatmul.mubr.msk.f32.gmra.mrb[2].mxu0 %vm25_vm0, %v118_v9 }
  0x85   :  { %v206_v20 = vpop.permute.xlu1 %205 }
  0x89   :  { %v210_v32 = vpop.permute.xlu1 %209 }
  0xd7   :  { %v98_v10 = vpop.f32.mrb[0].mxu1 }
  0xd8   :  { %v100_v11 = vpop.f32.mrb[1].mxu1  ;;  %v109_v16 = vadd.f32 %v98_v10, %v19_v14 }
  0xd9   :  { %v110_v17 = vadd.f32 %v100_v11, %v20_v15 }
  0xdb   :  { %v104_v12 = vpop.f32.mrb[2].mxu1 }
  0xdc   :  { %v106_v13 = vpop.f32.mrb[3].mxu1  ;;  %v111_v23 = vadd.f32 %v104_v12, %v21_v18 }
  0xdd   :  { %v112_v26 = vadd.f32 %v106_v13, %v22_v19 }
 0x148   :  { %v189_v21 = vpop.f32.mrb[0].mxu0 }
 0x149   :  { %v200_v22 = vadd.f32 %v189_v21, %v109_v16  ;;  %v191_v24 = vpop.f32.mrb[1].mxu0 }
 0x14a   :  { %v201_v25 = vadd.f32 %v191_v24, %v110_v17 }
 0x14b   :  { %v212_v27 = vadd.f32 %v206_v20, %v200_v22 }
 0x14c   :  { %v213_v28 = vadd.f32 %v206_v20, %v201_v25  ;;  %v195_v29 = vpop.f32.mrb[2].mxu0 }
 0x14d   :  { %216 = vst [vmem:[%s319_s4] sm:$0xff] %v212_v27  ;;  %v202_v30 = vadd.f32 %v195_v29, %v111_v23  ;;  %v197_v31 = vpop.f32.mrb[3].mxu0 }
 0x14e   :  { %217 = vst [vmem:[%s319_s4 + $0x8] sm:$0xff] %v213_v28  ;;  %v203_v33 = vadd.f32 %v197_v31, %v112_v26 }
 0x14f   :  { %v214_v34 = vadd.f32 %v210_v32, %v202_v30 }
 0x150   :  { %v215_v35 = vadd.f32 %v210_v32, %v203_v33 }
 0x151   :  { %218 = vst [vmem:[%s319_s4 + $0x10] sm:$0xff] %v214_v34 }
 0x152   :  { %219 = vst [vmem:[%s319_s4 + $0x18] sm:$0xff] %v215_v35 }

</bundles_post_ra>
